<compile_context>
chip_gen: v5e
topology: v5e:2x2
jax: 0.10.0
libtpu: 0.0.40
codegen_flags: <defaults>
</compile_context>

<pallas_src>
import functools

import numpy as np
import jax
import jax.numpy as jnp
from jax import lax
from jax.experimental import pallas as pl
from jax.experimental.pallas import tpu as pltpu


# ----------------------------------------------------------------------------
# Fused MiniResBlock kernel (one pallas_call per forward)
# ----------------------------------------------------------------------------
def _make_mini_res_block_kernel(H, W, Cin, Cout, reduce, res_mode):
    s = 2 if reduce else 1
    Ho, Wo = H // s, W // s
    CW1 = Cin * (Wo if reduce else W)   # lane width of stage-1 depthwise operands
    CW2 = Cout * Wo                     # lane width of stage-2 / output slabs

    def _pointwise(acc, prow_ref, cin, cout, wsp):
        """1x1 conv over channels (channel-major lanes) as shifted dense VPU FMAs.

        acc: (R, cin*wsp).  prow_ref: (cin+cout-1, cout*wsp) per-lane weight rows with
        invalid (ci, co) pairs already zeroed (and BN scale folded in).  -> (R, cout*wsp)
        """
        ring = max(cin, cout) * wsp
        out_w = cout * wsp
        rows = acc.shape[0]
        if cin * wsp < ring:
            acc = jnp.concatenate(
                [acc, jnp.zeros((rows, ring - cin * wsp), acc.dtype)], axis=1)
        y = jnp.zeros((rows, out_w), jnp.float32)
        for sidx in range(cin + cout - 1):
            delta = sidx - (cin - 1)                 # (co - ci) realized by this shift
            shift = (delta * wsp) % ring
            rolled = acc if shift == 0 else jnp.roll(acc, shift, axis=1)
            if ring > out_w:
                rolled = rolled[:, :out_w]
            y = y + rolled * prow_ref[sidx:sidx + 1, :]
        return y

    def kernel(*refs):
        if reduce:
            if res_mode == "proj":
                (xe_ref, xo_ref, w1_ref, p1_ref, b1_ref, w2_ref, p2_ref, b2_ref,
                 pr_ref, br_ref, out_ref, xep_sc, xop_sc, y1p_sc) = refs
            else:
                (xe_ref, xo_ref, w1_ref, p1_ref, b1_ref, w2_ref, p2_ref, b2_ref,
                 out_ref, xep_sc, xop_sc, y1p_sc) = refs
        else:
            if res_mode == "proj":
                (x_ref, w1_ref, p1_ref, b1_ref, w2_ref, p2_ref, b2_ref,
                 pr_ref, br_ref, out_ref, xp_sc, y1p_sc) = refs
            else:
                (x_ref, w1_ref, p1_ref, b1_ref, w2_ref, p2_ref, b2_ref,
                 out_ref, xp_sc, y1p_sc) = refs

        f32 = jnp.float32
        w1 = w1_ref[...]        # (9, CW1) per-tap, per-lane depthwise weights (masked)
        w2 = w2_ref[...]        # (9, CW2)

        # ------ stage 1: depthwise 3x3, stride s (pure VPU FMAs, halo in VMEM) ------
        if not reduce:
            x = x_ref[0].astype(f32)                        # (H, Cin*W)
            xp_sc[...] = jnp.zeros_like(xp_sc)              # zero halo rows + lane pads
            xp_sc[1:H + 1, 1:CW1 + 1] = x
            xp = xp_sc[...]                                 # (H+2, CW1+2)
            acc1 = jnp.zeros((H, CW1), f32)
            for dh in range(3):
                for dw in range(3):
                    t = dh * 3 + dw
                    acc1 = acc1 + xp[dh:dh + H, dw:dw + CW1] * w1[t:t + 1, :]
        else:
            xe = xe_ref[0].astype(f32)                      # even input columns
            xo = xo_ref[0].astype(f32)                      # odd  input columns
            xep_sc[...] = jnp.zeros_like(xep_sc)
            xop_sc[...] = jnp.zeros_like(xop_sc)
            xep_sc[1:H + 1, :] = xe
            xop_sc[1:H + 1, 1:CW1 + 1] = xo
            xep = xep_sc[...]                               # (H+1, CW1)
            xop = xop_sc[...]                               # (H+1, CW1+1)
            acc1 = jnp.zeros((Ho, CW1), f32)
            for dh in range(3):
                stop = dh + 2 * Ho - 1
                for dw in range(3):
                    t = dh * 3 + dw
                    if dw == 0:                             # input column 2w'-1
                        slab = xop[dh:stop:2, 0:CW1]
                    elif dw == 1:                           # input column 2w'
                        slab = xep[dh:stop:2, 0:CW1]
                    else:                                   # input column 2w'+1
                        slab = xop[dh:stop:2, 1:CW1 + 1]
                    acc1 = acc1 + slab * w1[t:t + 1, :]

        # ------ stage 1: pointwise 1x1 (BN scale folded) + bias + SiLU --------------
        y1 = _pointwise(acc1, p1_ref, Cin, Cout, Wo) + b1_ref[...]
        y1 = y1 * jax.nn.sigmoid(y1)                        # (Ho, CW2)

        # ------ residual branch (kept in VMEM / vregs, no HBM round-trip) -----------
        if res_mode == "identity":
            res = x
        elif res_mode == "avgpool":
            ssum = xep + xop[:, 1:CW1 + 1]
            res = 0.25 * (ssum[1:2 * Ho:2, :] + ssum[2:2 * Ho + 1:2, :])
        else:  # "proj": 1x1 conv (stride s) + folded BN
            xs = xep[1:2 * Ho:2, :] if reduce else x
            res = _pointwise(xs, pr_ref, Cin, Cout, Wo) + br_ref[...]

        # ------ stage 2: depthwise 3x3 stride 1 + pointwise + SiLU + residual add ---
        y1p_sc[...] = jnp.zeros_like(y1p_sc)
        y1p_sc[1:Ho + 1, 1:CW2 + 1] = y1
        y1p = y1p_sc[...]                                   # (Ho+2, CW2+2)
        acc2 = jnp.zeros((Ho, CW2), f32)
        for dh in range(3):
            for dw in range(3):
                t = dh * 3 + dw
                acc2 = acc2 + y1p[dh:dh + Ho, dw:dw + CW2] * w2[t:t + 1, :]

        y2 = _pointwise(acc2, p2_ref, Cout, Cout, Wo) + b2_ref[...]
        y2 = y2 * jax.nn.sigmoid(y2)
        out_ref[0] = (y2 + res).astype(out_ref.dtype)       # lane-dense store

    return kernel


# ----------------------------------------------------------------------------
# Per-lane parameter rows (parameter-only transforms, done once in the wrapper)
# ----------------------------------------------------------------------------
def _dw_weight_rows(wd, seg_w, stride):
    """Per-tap per-lane depthwise weight rows (channel-major lanes), with the
    left/right column-border masks folded in so the in-kernel loop is pure FMAs."""
    C = wd.shape[-1]
    w_in_seg = np.arange(C * seg_w) % seg_w
    rows = []
    for dh in range(3):
        for dw in range(3):
            r = jnp.repeat(wd[dh, dw], seg_w)                       # (C*seg_w,)
            if dw == 0:                                             # reads col w-1 / 2w'-1
                r = r * jnp.asarray(w_in_seg != 0, r.dtype)
            elif dw == 2 and stride == 1:                           # reads col w+1
                r = r * jnp.asarray(w_in_seg != seg_w - 1, r.dtype)
            rows.append(r)
    return jnp.stack(rows)                                          # (9, C*seg_w)


def _pw_weight_rows(wp, bn_scale, seg_w):
    """Per-shift per-lane rows for the 1x1 conv as shifted FMAs; the eval-mode
    BatchNorm scale is folded into the weights (compile-time constant fold)."""
    Cin, Cout = wp.shape
    wps = wp * bn_scale[None, :]
    co = np.arange(Cout)
    rows = []
    for sidx in range(Cin + Cout - 1):
        delta = sidx - (Cin - 1)
        ci = co - delta
        valid = jnp.asarray((ci >= 0) & (ci < Cin))
        g = jnp.where(valid, wps[np.clip(ci, 0, Cin - 1), co], 0.0)  # (Cout,)
        rows.append(jnp.repeat(g, seg_w))
    return jnp.stack(rows)                                          # (Cin+Cout-1, Cout*seg_w)


def _bias_row(bias, seg_w):
    return jnp.repeat(bias, seg_w)[None, :]                         # (1, Cout*seg_w)


# ----------------------------------------------------------------------------
# MiniResBlock forward (single pallas_call)
# ----------------------------------------------------------------------------
@functools.partial(jax.jit, static_argnums=(2, 3, 4))
def mini_res_block(x_nchw, p, chan_in, chan_out, reduce=False):
    N, Cin, H, W = x_nchw.shape
    assert Cin == chan_in
    Cout = chan_out
    s1 = 2 if reduce else 1
    if reduce:
        assert H % 2 == 0 and W % 2 == 0, "reduce=True requires even spatial dims"
    Ho, Wo = H // s1, W // s1

    if Cin == Cout and not reduce:
        res_mode = "identity"
    elif Cin == Cout and reduce:
        res_mode = "avgpool"
    else:
        res_mode = "proj"

    # NCHW -> channel-major lane-flattened slabs (N, H, Cin*W), lane = c*W + w.
    xf = jnp.transpose(x_nchw, (0, 2, 1, 3)).astype(jnp.float32)    # (N, H, Cin, W)

    if not reduce:
        data = [xf.reshape(N, H, Cin * W)]
        data_specs = [pl.BlockSpec((1, H, Cin * W), lambda n: (n, 0, 0))]
    else:
        # even/odd column planes: kernel gathers the stride-2 taps directly
        xe = xf[:, :, :, 0::2].reshape(N, H, Cin * Wo)
        xo = xf[:, :, :, 1::2].reshape(N, H, Cin * Wo)
        data = [xe, xo]
        data_specs = [pl.BlockSpec((1, H, Cin * Wo), lambda n: (n, 0, 0)),
                      pl.BlockSpec((1, H, Cin * Wo), lambda n: (n, 0, 0))]

    seg1 = Wo if reduce else W
    params = [
        _dw_weight_rows(p["wd1"], seg1, s1),                 # (9, Cin*seg1)
        _pw_weight_rows(p["wp1"], p["sc1"], Wo),             # (Cin+Cout-1, Cout*Wo)
        _bias_row(p["bi1"], Wo),                             # (1, Cout*Wo)
        _dw_weight_rows(p["wd2"], Wo, 1),                    # (9, Cout*Wo)
        _pw_weight_rows(p["wp2"], p["sc2"], Wo),             # (2*Cout-1, Cout*Wo)
        _bias_row(p["bi2"], Wo),                             # (1, Cout*Wo)
    ]
    if res_mode == "proj":
        params += [_pw_weight_rows(p["wr"], p["scr"], Wo),   # (Cin+Cout-1, Cout*Wo)
                   _bias_row(p["bir"], Wo)]                  # (1, Cout*Wo)
    param_specs = [pl.BlockSpec(a.shape, lambda n: (0, 0)) for a in params]

    CW1 = Cin * seg1
    CW2 = Cout * Wo
    if not reduce:
        scratch = [pltpu.VMEM((H + 2, CW1 + 2), jnp.float32),    # stage-1 halo pad
                   pltpu.VMEM((Ho + 2, CW2 + 2), jnp.float32)]   # stage-2 halo pad
    else:
        scratch = [pltpu.VMEM((H + 1, CW1), jnp.float32),        # even cols, row halo
                   pltpu.VMEM((H + 1, CW1 + 1), jnp.float32),    # odd cols, row+lane halo
                   pltpu.VMEM((Ho + 2, CW2 + 2), jnp.float32)]   # stage-2 halo pad

    out = pl.pallas_call(
        _make_mini_res_block_kernel(H, W, Cin, Cout, reduce, res_mode),
        out_shape=jax.ShapeDtypeStruct((N, Ho, CW2), jnp.float32),
        grid=(N,),
        in_specs=data_specs + param_specs,
        out_specs=pl.BlockSpec((1, Ho, CW2), lambda n: (n, 0, 0)),
        scratch_shapes=scratch,
        compiler_params=pltpu.CompilerParams(
            dimension_semantics=("parallel",)),
    )(*data, *params)

    # (N, Ho, Cout*Wo) lane-dense output -> NCHW
    return jnp.transpose(out.reshape(N, Ho, Cout, Wo), (0, 2, 1, 3))


# ----------------------------------------------------------------------------
# Deterministic parameter init + folded (eval-mode) BN
# ----------------------------------------------------------------------------
def fold_bn(gamma, beta, mean, var, eps=1e-5):
    scale = gamma / jnp.sqrt(var + eps)
    bias = beta - mean * scale
    return scale, bias


def init_params(key, cin, cout):
    ks = jax.random.split(key, 8)

    def bn(k, c):
        k1, k2, k3, k4 = jax.random.split(k, 4)
        gamma = 1.0 + 0.1 * jax.random.normal(k1, (c,), jnp.float32)
        beta = 0.1 * jax.random.normal(k2, (c,), jnp.float32)
        mean = 0.1 * jax.random.normal(k3, (c,), jnp.float32)
        var = 0.5 + jax.random.uniform(k4, (c,), jnp.float32)
        return gamma, beta, mean, var

    p = {}
    p["wd1"] = 0.2 * jax.random.normal(ks[0], (3, 3, cin), jnp.float32)   # depthwise (HWC)
    p["wp1"] = 0.2 * jax.random.normal(ks[1], (cin, cout), jnp.float32)   # pointwise (Cin,Cout)
    p["sc1"], p["bi1"] = fold_bn(*bn(ks[2], cout))
    p["wd2"] = 0.2 * jax.random.normal(ks[3], (3, 3, cout), jnp.float32)
    p["wp2"] = 0.2 * jax.random.normal(ks[4], (cout, cout), jnp.float32)
    p["sc2"], p["bi2"] = fold_bn(*bn(ks[5], cout))
    p["wr"] = 0.2 * jax.random.normal(ks[6], (cin, cout), jnp.float32)    # residual 1x1
    p["scr"], p["bir"] = fold_bn(*bn(ks[7], cout))
    return p


# ----------------------------------------------------------------------------
# Pure-JAX (lax.conv) reference for the correctness check
# ----------------------------------------------------------------------------
def _ref_dsconv(x, wd, wp, sc, bi, stride):
    C = x.shape[1]
    wd_oihw = jnp.transpose(wd, (2, 0, 1))[:, None, :, :]               # (C,1,3,3)
    y = lax.conv_general_dilated(x, wd_oihw, (stride, stride), ((1, 1), (1, 1)),
                                 dimension_numbers=("NCHW", "OIHW", "NCHW"),
                                 feature_group_count=C)
    wp_oihw = jnp.transpose(wp, (1, 0))[:, :, None, None]                # (Cout,Cin,1,1)
    y = lax.conv_general_dilated(y, wp_oihw, (1, 1), ((0, 0), (0, 0)),
                                 dimension_numbers=("NCHW", "OIHW", "NCHW"))
    y = y * sc[None, :, None, None] + bi[None, :, None, None]
    return y * jax.nn.sigmoid(y)


def ref_forward(x, p, cin, cout, reduce):
    s1 = 2 if reduce else 1
    y = _ref_dsconv(x, p["wd1"], p["wp1"], p["sc1"], p["bi1"], s1)
    y = _ref_dsconv(y, p["wd2"], p["wp2"], p["sc2"], p["bi2"], 1)
    if cin == cout and not reduce:
        res = x
    elif cin == cout and reduce:
        res = lax.reduce_window(x, 0.0, lax.add, (1, 1, 2, 2), (1, 1, 2, 2), "VALID") * 0.25
    else:
        xr = x[:, :, ::s1, ::s1]
        wr_oihw = jnp.transpose(p["wr"], (1, 0))[:, :, None, None]
        res = lax.conv_general_dilated(xr, wr_oihw, (1, 1), ((0, 0), (0, 0)),
                                       dimension_numbers=("NCHW", "OIHW", "NCHW"))
        res = res * p["scr"][None, :, None, None] + p["bir"][None, :, None, None]
    return y + res


# ----------------------------------------------------------------------------
if __name__ == "__main__":
    key = jax.random.PRNGKey(0)
    N, H, W = 2, 16, 16
    configs = [
        (4, 8, False),   # projection residual, stride 1   (primary spec shape)
        (4, 4, False),   # identity residual
        (4, 4, True),    # avg-pool residual, stride 2
        (4, 8, True),    # projection residual, stride 2
    ]
    for cin, cout, red in configs:
        key, kx, kp = jax.random.split(key, 3)
        x = jax.random.normal(kx, (N, cin, H, W), jnp.float32)
        params = init_params(kp, cin, cout)

        out = mini_res_block(x, params, cin, cout, red)
        out = jax.block_until_ready(out)
        s1 = 2 if red else 1
        assert out.shape == (N, cout, H // s1, W // s1), out.shape

        ref = ref_forward(x, params, cin, cout, red)
        np.testing.assert_allclose(np.asarray(out), np.asarray(ref),
                                   rtol=1e-4, atol=1e-4)

    print("KERNEL_OK")
</pallas_src>

<mosaic_0001>
module attributes {stable_mosaic.version = 11 : i64} {
  func.func @kernel(%arg0: i32, %arg1: memref<1x16x64xf32, #tpu.memory_space<vmem>>, %arg2: memref<9x64xf32, #tpu.memory_space<vmem>>, %arg3: memref<11x128xf32, #tpu.memory_space<vmem>>, %arg4: memref<1x128xf32, #tpu.memory_space<vmem>>, %arg5: memref<9x128xf32, #tpu.memory_space<vmem>>, %arg6: memref<15x128xf32, #tpu.memory_space<vmem>>, %arg7: memref<1x128xf32, #tpu.memory_space<vmem>>, %arg8: memref<11x128xf32, #tpu.memory_space<vmem>>, %arg9: memref<1x128xf32, #tpu.memory_space<vmem>>, %arg10: memref<1x16x128xf32, #tpu.memory_space<vmem>>, %arg11: memref<18x66xf32, #tpu.memory_space<vmem>>, %arg12: memref<18x130xf32, #tpu.memory_space<vmem>>) attributes {dimension_semantics = [#tpu.dimension_semantics<parallel>], iteration_bounds = array<i64: 2>, scalar_prefetch = 0 : i64, scratch_operands = 2 : i64, tpu.core_type = #tpu.core_type<tc>, window_params = [{transform_indices = @transform_0, window_bounds = array<i64: 1, 16, 64>}, {pipeline_mode = #tpu.pipeline_mode<synchronous>, transform_indices = @transform_1, window_bounds = array<i64: 9, 64>}, {pipeline_mode = #tpu.pipeline_mode<synchronous>, transform_indices = @transform_2, window_bounds = array<i64: 11, 128>}, {pipeline_mode = #tpu.pipeline_mode<synchronous>, transform_indices = @transform_3, window_bounds = array<i64: 1, 128>}, {pipeline_mode = #tpu.pipeline_mode<synchronous>, transform_indices = @transform_4, window_bounds = array<i64: 9, 128>}, {pipeline_mode = #tpu.pipeline_mode<synchronous>, transform_indices = @transform_5, window_bounds = array<i64: 15, 128>}, {pipeline_mode = #tpu.pipeline_mode<synchronous>, transform_indices = @transform_6, window_bounds = array<i64: 1, 128>}, {pipeline_mode = #tpu.pipeline_mode<synchronous>, transform_indices = @transform_7, window_bounds = array<i64: 11, 128>}, {pipeline_mode = #tpu.pipeline_mode<synchronous>, transform_indices = @transform_8, window_bounds = array<i64: 1, 128>}, {transform_indices = @transform_9, window_bounds = array<i64: 1, 16, 128>}]} {
    %c0 = arith.constant 0 : index
    %c0_0 = arith.constant 0 : index
    %0 = vector.load %arg2[%c0, %c0_0] : memref<9x64xf32, #tpu.memory_space<vmem>>, vector<9x64xf32>
    %c0_1 = arith.constant 0 : index
    %c0_2 = arith.constant 0 : index
    %1 = vector.load %arg5[%c0_1, %c0_2] : memref<9x128xf32, #tpu.memory_space<vmem>>, vector<9x128xf32>
    %c0_3 = arith.constant 0 : index
    %c0_4 = arith.constant 0 : index
    %c0_5 = arith.constant 0 : index
    %2 = vector.load %arg1[%c0_3, %c0_4, %c0_5] : memref<1x16x64xf32, #tpu.memory_space<vmem>>, vector<1x16x64xf32>
    %3 = vector.shape_cast %2 : vector<1x16x64xf32> to vector<16x64xf32>
    %cst = arith.constant 0.000000e+00 : f32
    %4 = vector.broadcast %cst : f32 to vector<18x66xf32>
    %c0_6 = arith.constant 0 : index
    %c0_7 = arith.constant 0 : index
    %5 = vector.load %arg11[%c0_6, %c0_7] : memref<18x66xf32, #tpu.memory_space<vmem>>, vector<18x66xf32>
    tpu.vector_store %arg11[%c0_6, %c0_7], %4 {strides = array<i32>} : memref<18x66xf32, #tpu.memory_space<vmem>>, vector<18x66xf32>,
    %c1 = arith.constant 1 : index
    %c1_8 = arith.constant 1 : index
    %6 = vector.load %arg11[%c1, %c1_8] : memref<18x66xf32, #tpu.memory_space<vmem>>, vector<16x64xf32>
    tpu.vector_store %arg11[%c1, %c1_8], %3 {strides = array<i32>} : memref<18x66xf32, #tpu.memory_space<vmem>>, vector<16x64xf32>,
    %c0_9 = arith.constant 0 : index
    %c0_10 = arith.constant 0 : index
    %7 = vector.load %arg11[%c0_9, %c0_10] : memref<18x66xf32, #tpu.memory_space<vmem>>, vector<18x66xf32>
    %cst_11 = arith.constant 0.000000e+00 : f32
    %8 = vector.broadcast %cst_11 : f32 to vector<16x64xf32>
    %9 = vector.extract_strided_slice %7 {offsets = [0, 0], sizes = [16, 64], strides = [1, 1]} : vector<18x66xf32> to vector<16x64xf32>
    %10 = vector.extract_strided_slice %0 {offsets = [0, 0], sizes = [1, 64], strides = [1, 1]} : vector<9x64xf32> to vector<1x64xf32>
    %11 = vector.broadcast %10 : vector<1x64xf32> to vector<16x64xf32>
    %12 = arith.mulf %9, %11 : vector<16x64xf32>
    %13 = arith.addf %8, %12 : vector<16x64xf32>
    %14 = vector.extract_strided_slice %7 {offsets = [0, 1], sizes = [16, 64], strides = [1, 1]} : vector<18x66xf32> to vector<16x64xf32>
    %15 = vector.extract_strided_slice %0 {offsets = [1, 0], sizes = [1, 64], strides = [1, 1]} : vector<9x64xf32> to vector<1x64xf32>
    %16 = vector.broadcast %15 : vector<1x64xf32> to vector<16x64xf32>
    %17 = arith.mulf %14, %16 : vector<16x64xf32>
    %18 = arith.addf %13, %17 : vector<16x64xf32>
    %19 = vector.extract_strided_slice %7 {offsets = [0, 2], sizes = [16, 64], strides = [1, 1]} : vector<18x66xf32> to vector<16x64xf32>
    %20 = vector.extract_strided_slice %0 {offsets = [2, 0], sizes = [1, 64], strides = [1, 1]} : vector<9x64xf32> to vector<1x64xf32>
    %21 = vector.broadcast %20 : vector<1x64xf32> to vector<16x64xf32>
    %22 = arith.mulf %19, %21 : vector<16x64xf32>
    %23 = arith.addf %18, %22 : vector<16x64xf32>
    %24 = vector.extract_strided_slice %7 {offsets = [1, 0], sizes = [16, 64], strides = [1, 1]} : vector<18x66xf32> to vector<16x64xf32>
    %25 = vector.extract_strided_slice %0 {offsets = [3, 0], sizes = [1, 64], strides = [1, 1]} : vector<9x64xf32> to vector<1x64xf32>
    %26 = vector.broadcast %25 : vector<1x64xf32> to vector<16x64xf32>
    %27 = arith.mulf %24, %26 : vector<16x64xf32>
    %28 = arith.addf %23, %27 : vector<16x64xf32>
    %29 = vector.extract_strided_slice %7 {offsets = [1, 1], sizes = [16, 64], strides = [1, 1]} : vector<18x66xf32> to vector<16x64xf32>
    %30 = vector.extract_strided_slice %0 {offsets = [4, 0], sizes = [1, 64], strides = [1, 1]} : vector<9x64xf32> to vector<1x64xf32>
    %31 = vector.broadcast %30 : vector<1x64xf32> to vector<16x64xf32>
    %32 = arith.mulf %29, %31 : vector<16x64xf32>
    %33 = arith.addf %28, %32 : vector<16x64xf32>
    %34 = vector.extract_strided_slice %7 {offsets = [1, 2], sizes = [16, 64], strides = [1, 1]} : vector<18x66xf32> to vector<16x64xf32>
    %35 = vector.extract_strided_slice %0 {offsets = [5, 0], sizes = [1, 64], strides = [1, 1]} : vector<9x64xf32> to vector<1x64xf32>
    %36 = vector.broadcast %35 : vector<1x64xf32> to vector<16x64xf32>
    %37 = arith.mulf %34, %36 : vector<16x64xf32>
    %38 = arith.addf %33, %37 : vector<16x64xf32>
    %39 = vector.extract_strided_slice %7 {offsets = [2, 0], sizes = [16, 64], strides = [1, 1]} : vector<18x66xf32> to vector<16x64xf32>
    %40 = vector.extract_strided_slice %0 {offsets = [6, 0], sizes = [1, 64], strides = [1, 1]} : vector<9x64xf32> to vector<1x64xf32>
    %41 = vector.broadcast %40 : vector<1x64xf32> to vector<16x64xf32>
    %42 = arith.mulf %39, %41 : vector<16x64xf32>
    %43 = arith.addf %38, %42 : vector<16x64xf32>
    %44 = vector.extract_strided_slice %7 {offsets = [2, 1], sizes = [16, 64], strides = [1, 1]} : vector<18x66xf32> to vector<16x64xf32>
    %45 = vector.extract_strided_slice %0 {offsets = [7, 0], sizes = [1, 64], strides = [1, 1]} : vector<9x64xf32> to vector<1x64xf32>
    %46 = vector.broadcast %45 : vector<1x64xf32> to vector<16x64xf32>
    %47 = arith.mulf %44, %46 : vector<16x64xf32>
    %48 = arith.addf %43, %47 : vector<16x64xf32>
    %49 = vector.extract_strided_slice %7 {offsets = [2, 2], sizes = [16, 64], strides = [1, 1]} : vector<18x66xf32> to vector<16x64xf32>
    %50 = vector.extract_strided_slice %0 {offsets = [8, 0], sizes = [1, 64], strides = [1, 1]} : vector<9x64xf32> to vector<1x64xf32>
    %51 = vector.broadcast %50 : vector<1x64xf32> to vector<16x64xf32>
    %52 = arith.mulf %49, %51 : vector<16x64xf32>
    %53 = arith.addf %48, %52 : vector<16x64xf32>
    %cst_12 = arith.constant 0.000000e+00 : f32
    %54 = vector.broadcast %cst_12 : f32 to vector<16x64xf32>
    %55 = tpu.concatenate %53, %54 in 1 : vector<16x64xf32>, vector<16x64xf32> -> vector<16x128xf32>
    %cst_13 = arith.constant 0.000000e+00 : f32
    %56 = vector.broadcast %cst_13 : f32 to vector<16x128xf32>
    %57 = vector.extract_strided_slice %55 {offsets = [0, 48], sizes = [16, 80], strides = [1, 1]} : vector<16x128xf32> to vector<16x80xf32>
    %58 = vector.extract_strided_slice %55 {offsets = [0, 0], sizes = [16, 48], strides = [1, 1]} : vector<16x128xf32> to vector<16x48xf32>
    %59 = tpu.concatenate %57, %58 in 1 : vector<16x80xf32>, vector<16x48xf32> -> vector<16x128xf32>
    %c0_14 = arith.constant 0 : index
    %c0_15 = arith.constant 0 : index
    %60 = vector.load %arg3[%c0_14, %c0_15] : memref<11x128xf32, #tpu.memory_space<vmem>>, vector<1x128xf32>
    %61 = vector.broadcast %60 : vector<1x128xf32> to vector<16x128xf32>
    %62 = arith.mulf %59, %61 : vector<16x128xf32>
    %63 = arith.addf %56, %62 : vector<16x128xf32>
    %64 = vector.extract_strided_slice %55 {offsets = [0, 32], sizes = [16, 96], strides = [1, 1]} : vector<16x128xf32> to vector<16x96xf32>
    %65 = vector.extract_strided_slice %55 {offsets = [0, 0], sizes = [16, 32], strides = [1, 1]} : vector<16x128xf32> to vector<16x32xf32>
    %66 = tpu.concatenate %64, %65 in 1 : vector<16x96xf32>, vector<16x32xf32> -> vector<16x128xf32>
    %c1_16 = arith.constant 1 : index
    %c0_17 = arith.constant 0 : index
    %67 = vector.load %arg3[%c1_16, %c0_17] : memref<11x128xf32, #tpu.memory_space<vmem>>, vector<1x128xf32>
    %68 = vector.broadcast %67 : vector<1x128xf32> to vector<16x128xf32>
    %69 = arith.mulf %66, %68 : vector<16x128xf32>
    %70 = arith.addf %63, %69 : vector<16x128xf32>
    %71 = vector.extract_strided_slice %55 {offsets = [0, 16], sizes = [16, 112], strides = [1, 1]} : vector<16x128xf32> to vector<16x112xf32>
    %72 = vector.extract_strided_slice %55 {offsets = [0, 0], sizes = [16, 16], strides = [1, 1]} : vector<16x128xf32> to vector<16x16xf32>
    %73 = tpu.concatenate %71, %72 in 1 : vector<16x112xf32>, vector<16x16xf32> -> vector<16x128xf32>
    %c2 = arith.constant 2 : index
    %c0_18 = arith.constant 0 : index
    %74 = vector.load %arg3[%c2, %c0_18] : memref<11x128xf32, #tpu.memory_space<vmem>>, vector<1x128xf32>
    %75 = vector.broadcast %74 : vector<1x128xf32> to vector<16x128xf32>
    %76 = arith.mulf %73, %75 : vector<16x128xf32>
    %77 = arith.addf %70, %76 : vector<16x128xf32>
    %c3 = arith.constant 3 : index
    %c0_19 = arith.constant 0 : index
    %78 = vector.load %arg3[%c3, %c0_19] : memref<11x128xf32, #tpu.memory_space<vmem>>, vector<1x128xf32>
    %79 = vector.broadcast %78 : vector<1x128xf32> to vector<16x128xf32>
    %80 = arith.mulf %55, %79 : vector<16x128xf32>
    %81 = arith.addf %77, %80 : vector<16x128xf32>
    %82 = vector.extract_strided_slice %55 {offsets = [0, 112], sizes = [16, 16], strides = [1, 1]} : vector<16x128xf32> to vector<16x16xf32>
    %83 = vector.extract_strided_slice %55 {offsets = [0, 0], sizes = [16, 112], strides = [1, 1]} : vector<16x128xf32> to vector<16x112xf32>
    %84 = tpu.concatenate %82, %83 in 1 : vector<16x16xf32>, vector<16x112xf32> -> vector<16x128xf32>
    %c4 = arith.constant 4 : index
    %c0_20 = arith.constant 0 : index
    %85 = vector.load %arg3[%c4, %c0_20] : memref<11x128xf32, #tpu.memory_space<vmem>>, vector<1x128xf32>
    %86 = vector.broadcast %85 : vector<1x128xf32> to vector<16x128xf32>
    %87 = arith.mulf %84, %86 : vector<16x128xf32>
    %88 = arith.addf %81, %87 : vector<16x128xf32>
    %89 = vector.extract_strided_slice %55 {offsets = [0, 96], sizes = [16, 32], strides = [1, 1]} : vector<16x128xf32> to vector<16x32xf32>
    %90 = vector.extract_strided_slice %55 {offsets = [0, 0], sizes = [16, 96], strides = [1, 1]} : vector<16x128xf32> to vector<16x96xf32>
    %91 = tpu.concatenate %89, %90 in 1 : vector<16x32xf32>, vector<16x96xf32> -> vector<16x128xf32>
    %c5 = arith.constant 5 : index
    %c0_21 = arith.constant 0 : index
    %92 = vector.load %arg3[%c5, %c0_21] : memref<11x128xf32, #tpu.memory_space<vmem>>, vector<1x128xf32>
    %93 = vector.broadcast %92 : vector<1x128xf32> to vector<16x128xf32>
    %94 = arith.mulf %91, %93 : vector<16x128xf32>
    %95 = arith.addf %88, %94 : vector<16x128xf32>
    %96 = vector.extract_strided_slice %55 {offsets = [0, 80], sizes = [16, 48], strides = [1, 1]} : vector<16x128xf32> to vector<16x48xf32>
    %97 = vector.extract_strided_slice %55 {offsets = [0, 0], sizes = [16, 80], strides = [1, 1]} : vector<16x128xf32> to vector<16x80xf32>
    %98 = tpu.concatenate %96, %97 in 1 : vector<16x48xf32>, vector<16x80xf32> -> vector<16x128xf32>
    %c6 = arith.constant 6 : index
    %c0_22 = arith.constant 0 : index
    %99 = vector.load %arg3[%c6, %c0_22] : memref<11x128xf32, #tpu.memory_space<vmem>>, vector<1x128xf32>
    %100 = vector.broadcast %99 : vector<1x128xf32> to vector<16x128xf32>
    %101 = arith.mulf %98, %100 : vector<16x128xf32>
    %102 = arith.addf %95, %101 : vector<16x128xf32>
    %103 = vector.extract_strided_slice %55 {offsets = [0, 64], sizes = [16, 64], strides = [1, 1]} : vector<16x128xf32> to vector<16x64xf32>
    %104 = vector.extract_strided_slice %55 {offsets = [0, 0], sizes = [16, 64], strides = [1, 1]} : vector<16x128xf32> to vector<16x64xf32>
    %105 = tpu.concatenate %103, %104 in 1 : vector<16x64xf32>, vector<16x64xf32> -> vector<16x128xf32>
    %c7 = arith.constant 7 : index
    %c0_23 = arith.constant 0 : index
    %106 = vector.load %arg3[%c7, %c0_23] : memref<11x128xf32, #tpu.memory_space<vmem>>, vector<1x128xf32>
    %107 = vector.broadcast %106 : vector<1x128xf32> to vector<16x128xf32>
    %108 = arith.mulf %105, %107 : vector<16x128xf32>
    %109 = arith.addf %102, %108 : vector<16x128xf32>
    %110 = vector.extract_strided_slice %55 {offsets = [0, 48], sizes = [16, 80], strides = [1, 1]} : vector<16x128xf32> to vector<16x80xf32>
    %111 = vector.extract_strided_slice %55 {offsets = [0, 0], sizes = [16, 48], strides = [1, 1]} : vector<16x128xf32> to vector<16x48xf32>
    %112 = tpu.concatenate %110, %111 in 1 : vector<16x80xf32>, vector<16x48xf32> -> vector<16x128xf32>
    %c8 = arith.constant 8 : index
    %c0_24 = arith.constant 0 : index
    %113 = vector.load %arg3[%c8, %c0_24] : memref<11x128xf32, #tpu.memory_space<vmem>>, vector<1x128xf32>
    %114 = vector.broadcast %113 : vector<1x128xf32> to vector<16x128xf32>
    %115 = arith.mulf %112, %114 : vector<16x128xf32>
    %116 = arith.addf %109, %115 : vector<16x128xf32>
    %117 = vector.extract_strided_slice %55 {offsets = [0, 32], sizes = [16, 96], strides = [1, 1]} : vector<16x128xf32> to vector<16x96xf32>
    %118 = vector.extract_strided_slice %55 {offsets = [0, 0], sizes = [16, 32], strides = [1, 1]} : vector<16x128xf32> to vector<16x32xf32>
    %119 = tpu.concatenate %117, %118 in 1 : vector<16x96xf32>, vector<16x32xf32> -> vector<16x128xf32>
    %c9 = arith.constant 9 : index
    %c0_25 = arith.constant 0 : index
    %120 = vector.load %arg3[%c9, %c0_25] : memref<11x128xf32, #tpu.memory_space<vmem>>, vector<1x128xf32>
    %121 = vector.broadcast %120 : vector<1x128xf32> to vector<16x128xf32>
    %122 = arith.mulf %119, %121 : vector<16x128xf32>
    %123 = arith.addf %116, %122 : vector<16x128xf32>
    %124 = vector.extract_strided_slice %55 {offsets = [0, 16], sizes = [16, 112], strides = [1, 1]} : vector<16x128xf32> to vector<16x112xf32>
    %125 = vector.extract_strided_slice %55 {offsets = [0, 0], sizes = [16, 16], strides = [1, 1]} : vector<16x128xf32> to vector<16x16xf32>
    %126 = tpu.concatenate %124, %125 in 1 : vector<16x112xf32>, vector<16x16xf32> -> vector<16x128xf32>
    %c10 = arith.constant 10 : index
    %c0_26 = arith.constant 0 : index
    %127 = vector.load %arg3[%c10, %c0_26] : memref<11x128xf32, #tpu.memory_space<vmem>>, vector<1x128xf32>
    %128 = vector.broadcast %127 : vector<1x128xf32> to vector<16x128xf32>
    %129 = arith.mulf %126, %128 : vector<16x128xf32>
    %130 = arith.addf %123, %129 : vector<16x128xf32>
    %c0_27 = arith.constant 0 : index
    %c0_28 = arith.constant 0 : index
    %131 = vector.load %arg4[%c0_27, %c0_28] : memref<1x128xf32, #tpu.memory_space<vmem>>, vector<1x128xf32>
    %132 = vector.broadcast %131 : vector<1x128xf32> to vector<16x128xf32>
    %133 = arith.addf %130, %132 : vector<16x128xf32>
    %134 = arith.negf %133 : vector<16x128xf32>
    %135 = math.exp %134 : vector<16x128xf32>
    %cst_29 = arith.constant 1.000000e+00 : f32
    %136 = vector.broadcast %cst_29 : f32 to vector<16x128xf32>
    %137 = arith.addf %136, %135 : vector<16x128xf32>
    %138 = arith.divf %136, %137 : vector<16x128xf32>
    %139 = arith.mulf %133, %138 : vector<16x128xf32>
    %cst_30 = arith.constant 0.000000e+00 : f32
    %140 = vector.broadcast %cst_30 : f32 to vector<16x64xf32>
    %141 = tpu.concatenate %3, %140 in 1 : vector<16x64xf32>, vector<16x64xf32> -> vector<16x128xf32>
    %cst_31 = arith.constant 0.000000e+00 : f32
    %142 = vector.broadcast %cst_31 : f32 to vector<16x128xf32>
    %143 = vector.extract_strided_slice %141 {offsets = [0, 48], sizes = [16, 80], strides = [1, 1]} : vector<16x128xf32> to vector<16x80xf32>
    %144 = vector.extract_strided_slice %141 {offsets = [0, 0], sizes = [16, 48], strides = [1, 1]} : vector<16x128xf32> to vector<16x48xf32>
    %145 = tpu.concatenate %143, %144 in 1 : vector<16x80xf32>, vector<16x48xf32> -> vector<16x128xf32>
    %c0_32 = arith.constant 0 : index
    %c0_33 = arith.constant 0 : index
    %146 = vector.load %arg8[%c0_32, %c0_33] : memref<11x128xf32, #tpu.memory_space<vmem>>, vector<1x128xf32>
    %147 = vector.broadcast %146 : vector<1x128xf32> to vector<16x128xf32>
    %148 = arith.mulf %145, %147 : vector<16x128xf32>
    %149 = arith.addf %142, %148 : vector<16x128xf32>
    %150 = vector.extract_strided_slice %141 {offsets = [0, 32], sizes = [16, 96], strides = [1, 1]} : vector<16x128xf32> to vector<16x96xf32>
    %151 = vector.extract_strided_slice %141 {offsets = [0, 0], sizes = [16, 32], strides = [1, 1]} : vector<16x128xf32> to vector<16x32xf32>
    %152 = tpu.concatenate %150, %151 in 1 : vector<16x96xf32>, vector<16x32xf32> -> vector<16x128xf32>
    %c1_34 = arith.constant 1 : index
    %c0_35 = arith.constant 0 : index
    %153 = vector.load %arg8[%c1_34, %c0_35] : memref<11x128xf32, #tpu.memory_space<vmem>>, vector<1x128xf32>
    %154 = vector.broadcast %153 : vector<1x128xf32> to vector<16x128xf32>
    %155 = arith.mulf %152, %154 : vector<16x128xf32>
    %156 = arith.addf %149, %155 : vector<16x128xf32>
    %157 = vector.extract_strided_slice %141 {offsets = [0, 16], sizes = [16, 112], strides = [1, 1]} : vector<16x128xf32> to vector<16x112xf32>
    %158 = vector.extract_strided_slice %141 {offsets = [0, 0], sizes = [16, 16], strides = [1, 1]} : vector<16x128xf32> to vector<16x16xf32>
    %159 = tpu.concatenate %157, %158 in 1 : vector<16x112xf32>, vector<16x16xf32> -> vector<16x128xf32>
    %c2_36 = arith.constant 2 : index
    %c0_37 = arith.constant 0 : index
    %160 = vector.load %arg8[%c2_36, %c0_37] : memref<11x128xf32, #tpu.memory_space<vmem>>, vector<1x128xf32>
    %161 = vector.broadcast %160 : vector<1x128xf32> to vector<16x128xf32>
    %162 = arith.mulf %159, %161 : vector<16x128xf32>
    %163 = arith.addf %156, %162 : vector<16x128xf32>
    %c3_38 = arith.constant 3 : index
    %c0_39 = arith.constant 0 : index
    %164 = vector.load %arg8[%c3_38, %c0_39] : memref<11x128xf32, #tpu.memory_space<vmem>>, vector<1x128xf32>
    %165 = vector.broadcast %164 : vector<1x128xf32> to vector<16x128xf32>
    %166 = arith.mulf %141, %165 : vector<16x128xf32>
    %167 = arith.addf %163, %166 : vector<16x128xf32>
    %168 = vector.extract_strided_slice %141 {offsets = [0, 112], sizes = [16, 16], strides = [1, 1]} : vector<16x128xf32> to vector<16x16xf32>
    %169 = vector.extract_strided_slice %141 {offsets = [0, 0], sizes = [16, 112], strides = [1, 1]} : vector<16x128xf32> to vector<16x112xf32>
    %170 = tpu.concatenate %168, %169 in 1 : vector<16x16xf32>, vector<16x112xf32> -> vector<16x128xf32>
    %c4_40 = arith.constant 4 : index
    %c0_41 = arith.constant 0 : index
    %171 = vector.load %arg8[%c4_40, %c0_41] : memref<11x128xf32, #tpu.memory_space<vmem>>, vector<1x128xf32>
    %172 = vector.broadcast %171 : vector<1x128xf32> to vector<16x128xf32>
    %173 = arith.mulf %170, %172 : vector<16x128xf32>
    %174 = arith.addf %167, %173 : vector<16x128xf32>
    %175 = vector.extract_strided_slice %141 {offsets = [0, 96], sizes = [16, 32], strides = [1, 1]} : vector<16x128xf32> to vector<16x32xf32>
    %176 = vector.extract_strided_slice %141 {offsets = [0, 0], sizes = [16, 96], strides = [1, 1]} : vector<16x128xf32> to vector<16x96xf32>
    %177 = tpu.concatenate %175, %176 in 1 : vector<16x32xf32>, vector<16x96xf32> -> vector<16x128xf32>
    %c5_42 = arith.constant 5 : index
    %c0_43 = arith.constant 0 : index
    %178 = vector.load %arg8[%c5_42, %c0_43] : memref<11x128xf32, #tpu.memory_space<vmem>>, vector<1x128xf32>
    %179 = vector.broadcast %178 : vector<1x128xf32> to vector<16x128xf32>
    %180 = arith.mulf %177, %179 : vector<16x128xf32>
    %181 = arith.addf %174, %180 : vector<16x128xf32>
    %182 = vector.extract_strided_slice %141 {offsets = [0, 80], sizes = [16, 48], strides = [1, 1]} : vector<16x128xf32> to vector<16x48xf32>
    %183 = vector.extract_strided_slice %141 {offsets = [0, 0], sizes = [16, 80], strides = [1, 1]} : vector<16x128xf32> to vector<16x80xf32>
    %184 = tpu.concatenate %182, %183 in 1 : vector<16x48xf32>, vector<16x80xf32> -> vector<16x128xf32>
    %c6_44 = arith.constant 6 : index
    %c0_45 = arith.constant 0 : index
    %185 = vector.load %arg8[%c6_44, %c0_45] : memref<11x128xf32, #tpu.memory_space<vmem>>, vector<1x128xf32>
    %186 = vector.broadcast %185 : vector<1x128xf32> to vector<16x128xf32>
    %187 = arith.mulf %184, %186 : vector<16x128xf32>
    %188 = arith.addf %181, %187 : vector<16x128xf32>
    %189 = vector.extract_strided_slice %141 {offsets = [0, 64], sizes = [16, 64], strides = [1, 1]} : vector<16x128xf32> to vector<16x64xf32>
    %190 = vector.extract_strided_slice %141 {offsets = [0, 0], sizes = [16, 64], strides = [1, 1]} : vector<16x128xf32> to vector<16x64xf32>
    %191 = tpu.concatenate %189, %190 in 1 : vector<16x64xf32>, vector<16x64xf32> -> vector<16x128xf32>
    %c7_46 = arith.constant 7 : index
    %c0_47 = arith.constant 0 : index
    %192 = vector.load %arg8[%c7_46, %c0_47] : memref<11x128xf32, #tpu.memory_space<vmem>>, vector<1x128xf32>
    %193 = vector.broadcast %192 : vector<1x128xf32> to vector<16x128xf32>
    %194 = arith.mulf %191, %193 : vector<16x128xf32>
    %195 = arith.addf %188, %194 : vector<16x128xf32>
    %196 = vector.extract_strided_slice %141 {offsets = [0, 48], sizes = [16, 80], strides = [1, 1]} : vector<16x128xf32> to vector<16x80xf32>
    %197 = vector.extract_strided_slice %141 {offsets = [0, 0], sizes = [16, 48], strides = [1, 1]} : vector<16x128xf32> to vector<16x48xf32>
    %198 = tpu.concatenate %196, %197 in 1 : vector<16x80xf32>, vector<16x48xf32> -> vector<16x128xf32>
    %c8_48 = arith.constant 8 : index
    %c0_49 = arith.constant 0 : index
    %199 = vector.load %arg8[%c8_48, %c0_49] : memref<11x128xf32, #tpu.memory_space<vmem>>, vector<1x128xf32>
    %200 = vector.broadcast %199 : vector<1x128xf32> to vector<16x128xf32>
    %201 = arith.mulf %198, %200 : vector<16x128xf32>
    %202 = arith.addf %195, %201 : vector<16x128xf32>
    %203 = vector.extract_strided_slice %141 {offsets = [0, 32], sizes = [16, 96], strides = [1, 1]} : vector<16x128xf32> to vector<16x96xf32>
    %204 = vector.extract_strided_slice %141 {offsets = [0, 0], sizes = [16, 32], strides = [1, 1]} : vector<16x128xf32> to vector<16x32xf32>
    %205 = tpu.concatenate %203, %204 in 1 : vector<16x96xf32>, vector<16x32xf32> -> vector<16x128xf32>
    %c9_50 = arith.constant 9 : index
    %c0_51 = arith.constant 0 : index
    %206 = vector.load %arg8[%c9_50, %c0_51] : memref<11x128xf32, #tpu.memory_space<vmem>>, vector<1x128xf32>
    %207 = vector.broadcast %206 : vector<1x128xf32> to vector<16x128xf32>
    %208 = arith.mulf %205, %207 : vector<16x128xf32>
    %209 = arith.addf %202, %208 : vector<16x128xf32>
    %210 = vector.extract_strided_slice %141 {offsets = [0, 16], sizes = [16, 112], strides = [1, 1]} : vector<16x128xf32> to vector<16x112xf32>
    %211 = vector.extract_strided_slice %141 {offsets = [0, 0], sizes = [16, 16], strides = [1, 1]} : vector<16x128xf32> to vector<16x16xf32>
    %212 = tpu.concatenate %210, %211 in 1 : vector<16x112xf32>, vector<16x16xf32> -> vector<16x128xf32>
    %c10_52 = arith.constant 10 : index
    %c0_53 = arith.constant 0 : index
    %213 = vector.load %arg8[%c10_52, %c0_53] : memref<11x128xf32, #tpu.memory_space<vmem>>, vector<1x128xf32>
    %214 = vector.broadcast %213 : vector<1x128xf32> to vector<16x128xf32>
    %215 = arith.mulf %212, %214 : vector<16x128xf32>
    %216 = arith.addf %209, %215 : vector<16x128xf32>
    %c0_54 = arith.constant 0 : index
    %c0_55 = arith.constant 0 : index
    %217 = vector.load %arg9[%c0_54, %c0_55] : memref<1x128xf32, #tpu.memory_space<vmem>>, vector<1x128xf32>
    %218 = vector.broadcast %217 : vector<1x128xf32> to vector<16x128xf32>
    %219 = arith.addf %216, %218 : vector<16x128xf32>
    %cst_56 = arith.constant 0.000000e+00 : f32
    %220 = vector.broadcast %cst_56 : f32 to vector<18x130xf32>
    %c0_57 = arith.constant 0 : index
    %c0_58 = arith.constant 0 : index
    %221 = vector.load %arg12[%c0_57, %c0_58] : memref<18x130xf32, #tpu.memory_space<vmem>>, vector<18x130xf32>
    tpu.vector_store %arg12[%c0_57, %c0_58], %220 {strides = array<i32>} : memref<18x130xf32, #tpu.memory_space<vmem>>, vector<18x130xf32>,
    %c1_59 = arith.constant 1 : index
    %c1_60 = arith.constant 1 : index
    %222 = vector.load %arg12[%c1_59, %c1_60] : memref<18x130xf32, #tpu.memory_space<vmem>>, vector<16x128xf32>
    tpu.vector_store %arg12[%c1_59, %c1_60], %139 {strides = array<i32>} : memref<18x130xf32, #tpu.memory_space<vmem>>, vector<16x128xf32>,
    %c0_61 = arith.constant 0 : index
    %c0_62 = arith.constant 0 : index
    %223 = vector.load %arg12[%c0_61, %c0_62] : memref<18x130xf32, #tpu.memory_space<vmem>>, vector<18x130xf32>
    %cst_63 = arith.constant 0.000000e+00 : f32
    %224 = vector.broadcast %cst_63 : f32 to vector<16x128xf32>
    %225 = vector.extract_strided_slice %223 {offsets = [0, 0], sizes = [16, 128], strides = [1, 1]} : vector<18x130xf32> to vector<16x128xf32>
    %226 = vector.extract_strided_slice %1 {offsets = [0, 0], sizes = [1, 128], strides = [1, 1]} : vector<9x128xf32> to vector<1x128xf32>
    %227 = vector.broadcast %226 : vector<1x128xf32> to vector<16x128xf32>
    %228 = arith.mulf %225, %227 : vector<16x128xf32>
    %229 = arith.addf %224, %228 : vector<16x128xf32>
    %230 = vector.extract_strided_slice %223 {offsets = [0, 1], sizes = [16, 128], strides = [1, 1]} : vector<18x130xf32> to vector<16x128xf32>
    %231 = vector.extract_strided_slice %1 {offsets = [1, 0], sizes = [1, 128], strides = [1, 1]} : vector<9x128xf32> to vector<1x128xf32>
    %232 = vector.broadcast %231 : vector<1x128xf32> to vector<16x128xf32>
    %233 = arith.mulf %230, %232 : vector<16x128xf32>
    %234 = arith.addf %229, %233 : vector<16x128xf32>
    %235 = vector.extract_strided_slice %223 {offsets = [0, 2], sizes = [16, 128], strides = [1, 1]} : vector<18x130xf32> to vector<16x128xf32>
    %236 = vector.extract_strided_slice %1 {offsets = [2, 0], sizes = [1, 128], strides = [1, 1]} : vector<9x128xf32> to vector<1x128xf32>
    %237 = vector.broadcast %236 : vector<1x128xf32> to vector<16x128xf32>
    %238 = arith.mulf %235, %237 : vector<16x128xf32>
    %239 = arith.addf %234, %238 : vector<16x128xf32>
    %240 = vector.extract_strided_slice %223 {offsets = [1, 0], sizes = [16, 128], strides = [1, 1]} : vector<18x130xf32> to vector<16x128xf32>
    %241 = vector.extract_strided_slice %1 {offsets = [3, 0], sizes = [1, 128], strides = [1, 1]} : vector<9x128xf32> to vector<1x128xf32>
    %242 = vector.broadcast %241 : vector<1x128xf32> to vector<16x128xf32>
    %243 = arith.mulf %240, %242 : vector<16x128xf32>
    %244 = arith.addf %239, %243 : vector<16x128xf32>
    %245 = vector.extract_strided_slice %223 {offsets = [1, 1], sizes = [16, 128], strides = [1, 1]} : vector<18x130xf32> to vector<16x128xf32>
    %246 = vector.extract_strided_slice %1 {offsets = [4, 0], sizes = [1, 128], strides = [1, 1]} : vector<9x128xf32> to vector<1x128xf32>
    %247 = vector.broadcast %246 : vector<1x128xf32> to vector<16x128xf32>
    %248 = arith.mulf %245, %247 : vector<16x128xf32>
    %249 = arith.addf %244, %248 : vector<16x128xf32>
    %250 = vector.extract_strided_slice %223 {offsets = [1, 2], sizes = [16, 128], strides = [1, 1]} : vector<18x130xf32> to vector<16x128xf32>
    %251 = vector.extract_strided_slice %1 {offsets = [5, 0], sizes = [1, 128], strides = [1, 1]} : vector<9x128xf32> to vector<1x128xf32>
    %252 = vector.broadcast %251 : vector<1x128xf32> to vector<16x128xf32>
    %253 = arith.mulf %250, %252 : vector<16x128xf32>
    %254 = arith.addf %249, %253 : vector<16x128xf32>
    %255 = vector.extract_strided_slice %223 {offsets = [2, 0], sizes = [16, 128], strides = [1, 1]} : vector<18x130xf32> to vector<16x128xf32>
    %256 = vector.extract_strided_slice %1 {offsets = [6, 0], sizes = [1, 128], strides = [1, 1]} : vector<9x128xf32> to vector<1x128xf32>
    %257 = vector.broadcast %256 : vector<1x128xf32> to vector<16x128xf32>
    %258 = arith.mulf %255, %257 : vector<16x128xf32>
    %259 = arith.addf %254, %258 : vector<16x128xf32>
    %260 = vector.extract_strided_slice %223 {offsets = [2, 1], sizes = [16, 128], strides = [1, 1]} : vector<18x130xf32> to vector<16x128xf32>
    %261 = vector.extract_strided_slice %1 {offsets = [7, 0], sizes = [1, 128], strides = [1, 1]} : vector<9x128xf32> to vector<1x128xf32>
    %262 = vector.broadcast %261 : vector<1x128xf32> to vector<16x128xf32>
    %263 = arith.mulf %260, %262 : vector<16x128xf32>
    %264 = arith.addf %259, %263 : vector<16x128xf32>
    %265 = vector.extract_strided_slice %223 {offsets = [2, 2], sizes = [16, 128], strides = [1, 1]} : vector<18x130xf32> to vector<16x128xf32>
    %266 = vector.extract_strided_slice %1 {offsets = [8, 0], sizes = [1, 128], strides = [1, 1]} : vector<9x128xf32> to vector<1x128xf32>
    %267 = vector.broadcast %266 : vector<1x128xf32> to vector<16x128xf32>
    %268 = arith.mulf %265, %267 : vector<16x128xf32>
    %269 = arith.addf %264, %268 : vector<16x128xf32>
    %cst_64 = arith.constant 0.000000e+00 : f32
    %270 = vector.broadcast %cst_64 : f32 to vector<16x128xf32>
    %271 = vector.extract_strided_slice %269 {offsets = [0, 112], sizes = [16, 16], strides = [1, 1]} : vector<16x128xf32> to vector<16x16xf32>
    %272 = vector.extract_strided_slice %269 {offsets = [0, 0], sizes = [16, 112], strides = [1, 1]} : vector<16x128xf32> to vector<16x112xf32>
    %273 = tpu.concatenate %271, %272 in 1 : vector<16x16xf32>, vector<16x112xf32> -> vector<16x128xf32>
    %c0_65 = arith.constant 0 : index
    %c0_66 = arith.constant 0 : index
    %274 = vector.load %arg6[%c0_65, %c0_66] : memref<15x128xf32, #tpu.memory_space<vmem>>, vector<1x128xf32>
    %275 = vector.broadcast %274 : vector<1x128xf32> to vector<16x128xf32>
    %276 = arith.mulf %273, %275 : vector<16x128xf32>
    %277 = arith.addf %270, %276 : vector<16x128xf32>
    %278 = vector.extract_strided_slice %269 {offsets = [0, 96], sizes = [16, 32], strides = [1, 1]} : vector<16x128xf32> to vector<16x32xf32>
    %279 = vector.extract_strided_slice %269 {offsets = [0, 0], sizes = [16, 96], strides = [1, 1]} : vector<16x128xf32> to vector<16x96xf32>
    %280 = tpu.concatenate %278, %279 in 1 : vector<16x32xf32>, vector<16x96xf32> -> vector<16x128xf32>
    %c1_67 = arith.constant 1 : index
    %c0_68 = arith.constant 0 : index
    %281 = vector.load %arg6[%c1_67, %c0_68] : memref<15x128xf32, #tpu.memory_space<vmem>>, vector<1x128xf32>
    %282 = vector.broadcast %281 : vector<1x128xf32> to vector<16x128xf32>
    %283 = arith.mulf %280, %282 : vector<16x128xf32>
    %284 = arith.addf %277, %283 : vector<16x128xf32>
    %285 = vector.extract_strided_slice %269 {offsets = [0, 80], sizes = [16, 48], strides = [1, 1]} : vector<16x128xf32> to vector<16x48xf32>
    %286 = vector.extract_strided_slice %269 {offsets = [0, 0], sizes = [16, 80], strides = [1, 1]} : vector<16x128xf32> to vector<16x80xf32>
    %287 = tpu.concatenate %285, %286 in 1 : vector<16x48xf32>, vector<16x80xf32> -> vector<16x128xf32>
    %c2_69 = arith.constant 2 : index
    %c0_70 = arith.constant 0 : index
    %288 = vector.load %arg6[%c2_69, %c0_70] : memref<15x128xf32, #tpu.memory_space<vmem>>, vector<1x128xf32>
    %289 = vector.broadcast %288 : vector<1x128xf32> to vector<16x128xf32>
    %290 = arith.mulf %287, %289 : vector<16x128xf32>
    %291 = arith.addf %284, %290 : vector<16x128xf32>
    %292 = vector.extract_strided_slice %269 {offsets = [0, 64], sizes = [16, 64], strides = [1, 1]} : vector<16x128xf32> to vector<16x64xf32>
    %293 = vector.extract_strided_slice %269 {offsets = [0, 0], sizes = [16, 64], strides = [1, 1]} : vector<16x128xf32> to vector<16x64xf32>
    %294 = tpu.concatenate %292, %293 in 1 : vector<16x64xf32>, vector<16x64xf32> -> vector<16x128xf32>
    %c3_71 = arith.constant 3 : index
    %c0_72 = arith.constant 0 : index
    %295 = vector.load %arg6[%c3_71, %c0_72] : memref<15x128xf32, #tpu.memory_space<vmem>>, vector<1x128xf32>
    %296 = vector.broadcast %295 : vector<1x128xf32> to vector<16x128xf32>
    %297 = arith.mulf %294, %296 : vector<16x128xf32>
    %298 = arith.addf %291, %297 : vector<16x128xf32>
    %299 = vector.extract_strided_slice %269 {offsets = [0, 48], sizes = [16, 80], strides = [1, 1]} : vector<16x128xf32> to vector<16x80xf32>
    %300 = vector.extract_strided_slice %269 {offsets = [0, 0], sizes = [16, 48], strides = [1, 1]} : vector<16x128xf32> to vector<16x48xf32>
    %301 = tpu.concatenate %299, %300 in 1 : vector<16x80xf32>, vector<16x48xf32> -> vector<16x128xf32>
    %c4_73 = arith.constant 4 : index
    %c0_74 = arith.constant 0 : index
    %302 = vector.load %arg6[%c4_73, %c0_74] : memref<15x128xf32, #tpu.memory_space<vmem>>, vector<1x128xf32>
    %303 = vector.broadcast %302 : vector<1x128xf32> to vector<16x128xf32>
    %304 = arith.mulf %301, %303 : vector<16x128xf32>
    %305 = arith.addf %298, %304 : vector<16x128xf32>
    %306 = vector.extract_strided_slice %269 {offsets = [0, 32], sizes = [16, 96], strides = [1, 1]} : vector<16x128xf32> to vector<16x96xf32>
    %307 = vector.extract_strided_slice %269 {offsets = [0, 0], sizes = [16, 32], strides = [1, 1]} : vector<16x128xf32> to vector<16x32xf32>
    %308 = tpu.concatenate %306, %307 in 1 : vector<16x96xf32>, vector<16x32xf32> -> vector<16x128xf32>
    %c5_75 = arith.constant 5 : index
    %c0_76 = arith.constant 0 : index
    %309 = vector.load %arg6[%c5_75, %c0_76] : memref<15x128xf32, #tpu.memory_space<vmem>>, vector<1x128xf32>
    %310 = vector.broadcast %309 : vector<1x128xf32> to vector<16x128xf32>
    %311 = arith.mulf %308, %310 : vector<16x128xf32>
    %312 = arith.addf %305, %311 : vector<16x128xf32>
    %313 = vector.extract_strided_slice %269 {offsets = [0, 16], sizes = [16, 112], strides = [1, 1]} : vector<16x128xf32> to vector<16x112xf32>
    %314 = vector.extract_strided_slice %269 {offsets = [0, 0], sizes = [16, 16], strides = [1, 1]} : vector<16x128xf32> to vector<16x16xf32>
    %315 = tpu.concatenate %313, %314 in 1 : vector<16x112xf32>, vector<16x16xf32> -> vector<16x128xf32>
    %c6_77 = arith.constant 6 : index
    %c0_78 = arith.constant 0 : index
    %316 = vector.load %arg6[%c6_77, %c0_78] : memref<15x128xf32, #tpu.memory_space<vmem>>, vector<1x128xf32>
    %317 = vector.broadcast %316 : vector<1x128xf32> to vector<16x128xf32>
    %318 = arith.mulf %315, %317 : vector<16x128xf32>
    %319 = arith.addf %312, %318 : vector<16x128xf32>
    %c7_79 = arith.constant 7 : index
    %c0_80 = arith.constant 0 : index
    %320 = vector.load %arg6[%c7_79, %c0_80] : memref<15x128xf32, #tpu.memory_space<vmem>>, vector<1x128xf32>
    %321 = vector.broadcast %320 : vector<1x128xf32> to vector<16x128xf32>
    %322 = arith.mulf %269, %321 : vector<16x128xf32>
    %323 = arith.addf %319, %322 : vector<16x128xf32>
    %324 = vector.extract_strided_slice %269 {offsets = [0, 112], sizes = [16, 16], strides = [1, 1]} : vector<16x128xf32> to vector<16x16xf32>
    %325 = vector.extract_strided_slice %269 {offsets = [0, 0], sizes = [16, 112], strides = [1, 1]} : vector<16x128xf32> to vector<16x112xf32>
    %326 = tpu.concatenate %324, %325 in 1 : vector<16x16xf32>, vector<16x112xf32> -> vector<16x128xf32>
    %c8_81 = arith.constant 8 : index
    %c0_82 = arith.constant 0 : index
    %327 = vector.load %arg6[%c8_81, %c0_82] : memref<15x128xf32, #tpu.memory_space<vmem>>, vector<1x128xf32>
    %328 = vector.broadcast %327 : vector<1x128xf32> to vector<16x128xf32>
    %329 = arith.mulf %326, %328 : vector<16x128xf32>
    %330 = arith.addf %323, %329 : vector<16x128xf32>
    %331 = vector.extract_strided_slice %269 {offsets = [0, 96], sizes = [16, 32], strides = [1, 1]} : vector<16x128xf32> to vector<16x32xf32>
    %332 = vector.extract_strided_slice %269 {offsets = [0, 0], sizes = [16, 96], strides = [1, 1]} : vector<16x128xf32> to vector<16x96xf32>
    %333 = tpu.concatenate %331, %332 in 1 : vector<16x32xf32>, vector<16x96xf32> -> vector<16x128xf32>
    %c9_83 = arith.constant 9 : index
    %c0_84 = arith.constant 0 : index
    %334 = vector.load %arg6[%c9_83, %c0_84] : memref<15x128xf32, #tpu.memory_space<vmem>>, vector<1x128xf32>
    %335 = vector.broadcast %334 : vector<1x128xf32> to vector<16x128xf32>
    %336 = arith.mulf %333, %335 : vector<16x128xf32>
    %337 = arith.addf %330, %336 : vector<16x128xf32>
    %338 = vector.extract_strided_slice %269 {offsets = [0, 80], sizes = [16, 48], strides = [1, 1]} : vector<16x128xf32> to vector<16x48xf32>
    %339 = vector.extract_strided_slice %269 {offsets = [0, 0], sizes = [16, 80], strides = [1, 1]} : vector<16x128xf32> to vector<16x80xf32>
    %340 = tpu.concatenate %338, %339 in 1 : vector<16x48xf32>, vector<16x80xf32> -> vector<16x128xf32>
    %c10_85 = arith.constant 10 : index
    %c0_86 = arith.constant 0 : index
    %341 = vector.load %arg6[%c10_85, %c0_86] : memref<15x128xf32, #tpu.memory_space<vmem>>, vector<1x128xf32>
    %342 = vector.broadcast %341 : vector<1x128xf32> to vector<16x128xf32>
    %343 = arith.mulf %340, %342 : vector<16x128xf32>
    %344 = arith.addf %337, %343 : vector<16x128xf32>
    %345 = vector.extract_strided_slice %269 {offsets = [0, 64], sizes = [16, 64], strides = [1, 1]} : vector<16x128xf32> to vector<16x64xf32>
    %346 = vector.extract_strided_slice %269 {offsets = [0, 0], sizes = [16, 64], strides = [1, 1]} : vector<16x128xf32> to vector<16x64xf32>
    %347 = tpu.concatenate %345, %346 in 1 : vector<16x64xf32>, vector<16x64xf32> -> vector<16x128xf32>
    %c11 = arith.constant 11 : index
    %c0_87 = arith.constant 0 : index
    %348 = vector.load %arg6[%c11, %c0_87] : memref<15x128xf32, #tpu.memory_space<vmem>>, vector<1x128xf32>
    %349 = vector.broadcast %348 : vector<1x128xf32> to vector<16x128xf32>
    %350 = arith.mulf %347, %349 : vector<16x128xf32>
    %351 = arith.addf %344, %350 : vector<16x128xf32>
    %352 = vector.extract_strided_slice %269 {offsets = [0, 48], sizes = [16, 80], strides = [1, 1]} : vector<16x128xf32> to vector<16x80xf32>
    %353 = vector.extract_strided_slice %269 {offsets = [0, 0], sizes = [16, 48], strides = [1, 1]} : vector<16x128xf32> to vector<16x48xf32>
    %354 = tpu.concatenate %352, %353 in 1 : vector<16x80xf32>, vector<16x48xf32> -> vector<16x128xf32>
    %c12 = arith.constant 12 : index
    %c0_88 = arith.constant 0 : index
    %355 = vector.load %arg6[%c12, %c0_88] : memref<15x128xf32, #tpu.memory_space<vmem>>, vector<1x128xf32>
    %356 = vector.broadcast %355 : vector<1x128xf32> to vector<16x128xf32>
    %357 = arith.mulf %354, %356 : vector<16x128xf32>
    %358 = arith.addf %351, %357 : vector<16x128xf32>
    %359 = vector.extract_strided_slice %269 {offsets = [0, 32], sizes = [16, 96], strides = [1, 1]} : vector<16x128xf32> to vector<16x96xf32>
    %360 = vector.extract_strided_slice %269 {offsets = [0, 0], sizes = [16, 32], strides = [1, 1]} : vector<16x128xf32> to vector<16x32xf32>
    %361 = tpu.concatenate %359, %360 in 1 : vector<16x96xf32>, vector<16x32xf32> -> vector<16x128xf32>
    %c13 = arith.constant 13 : index
    %c0_89 = arith.constant 0 : index
    %362 = vector.load %arg6[%c13, %c0_89] : memref<15x128xf32, #tpu.memory_space<vmem>>, vector<1x128xf32>
    %363 = vector.broadcast %362 : vector<1x128xf32> to vector<16x128xf32>
    %364 = arith.mulf %361, %363 : vector<16x128xf32>
    %365 = arith.addf %358, %364 : vector<16x128xf32>
    %366 = vector.extract_strided_slice %269 {offsets = [0, 16], sizes = [16, 112], strides = [1, 1]} : vector<16x128xf32> to vector<16x112xf32>
    %367 = vector.extract_strided_slice %269 {offsets = [0, 0], sizes = [16, 16], strides = [1, 1]} : vector<16x128xf32> to vector<16x16xf32>
    %368 = tpu.concatenate %366, %367 in 1 : vector<16x112xf32>, vector<16x16xf32> -> vector<16x128xf32>
    %c14 = arith.constant 14 : index
    %c0_90 = arith.constant 0 : index
    %369 = vector.load %arg6[%c14, %c0_90] : memref<15x128xf32, #tpu.memory_space<vmem>>, vector<1x128xf32>
    %370 = vector.broadcast %369 : vector<1x128xf32> to vector<16x128xf32>
    %371 = arith.mulf %368, %370 : vector<16x128xf32>
    %372 = arith.addf %365, %371 : vector<16x128xf32>
    %c0_91 = arith.constant 0 : index
    %c0_92 = arith.constant 0 : index
    %373 = vector.load %arg7[%c0_91, %c0_92] : memref<1x128xf32, #tpu.memory_space<vmem>>, vector<1x128xf32>
    %374 = vector.broadcast %373 : vector<1x128xf32> to vector<16x128xf32>
    %375 = arith.addf %372, %374 : vector<16x128xf32>
    %376 = arith.negf %375 : vector<16x128xf32>
    %377 = math.exp %376 : vector<16x128xf32>
    %cst_93 = arith.constant 1.000000e+00 : f32
    %378 = vector.broadcast %cst_93 : f32 to vector<16x128xf32>
    %379 = arith.addf %378, %377 : vector<16x128xf32>
    %380 = arith.divf %378, %379 : vector<16x128xf32>
    %381 = arith.mulf %375, %380 : vector<16x128xf32>
    %382 = arith.addf %381, %219 : vector<16x128xf32>
    %c0_94 = arith.constant 0 : index
    %c0_95 = arith.constant 0 : index
    %c0_96 = arith.constant 0 : index
    %383 = vector.load %arg10[%c0_94, %c0_95, %c0_96] : memref<1x16x128xf32, #tpu.memory_space<vmem>>, vector<1x16x128xf32>
    %384 = vector.shape_cast %383 : vector<1x16x128xf32> to vector<16x128xf32>
    %385 = vector.shape_cast %382 : vector<16x128xf32> to vector<1x16x128xf32>
    tpu.vector_store %arg10[%c0_94, %c0_95, %c0_96], %385 {strides = array<i32>} : memref<1x16x128xf32, #tpu.memory_space<vmem>>, vector<1x16x128xf32>,
    return
  }
  func.func @transform_0(%arg0: i32) -> (i32, i32, i32) {
    %c0_i32 = arith.constant 0 : i32
    %c0_i32_0 = arith.constant 0 : i32
    %c0_i32_1 = arith.constant 0 : i32
    return %arg0, %c0_i32, %c0_i32_0 : i32, i32, i32
  }
  func.func @transform_1(%arg0: i32) -> (i32, i32) {
    %c0_i32 = arith.constant 0 : i32
    %c0_i32_0 = arith.constant 0 : i32
    %c0_i32_1 = arith.constant 0 : i32
    return %c0_i32, %c0_i32_0 : i32, i32
  }
  func.func @transform_2(%arg0: i32) -> (i32, i32) {
    %c0_i32 = arith.constant 0 : i32
    %c0_i32_0 = arith.constant 0 : i32
    %c0_i32_1 = arith.constant 0 : i32
    return %c0_i32, %c0_i32_0 : i32, i32
  }
  func.func @transform_3(%arg0: i32) -> (i32, i32) {
    %c0_i32 = arith.constant 0 : i32
    %c0_i32_0 = arith.constant 0 : i32
    %c0_i32_1 = arith.constant 0 : i32
    return %c0_i32, %c0_i32_0 : i32, i32
  }
  func.func @transform_4(%arg0: i32) -> (i32, i32) {
    %c0_i32 = arith.constant 0 : i32
    %c0_i32_0 = arith.constant 0 : i32
    %c0_i32_1 = arith.constant 0 : i32
    return %c0_i32, %c0_i32_0 : i32, i32
  }
  func.func @transform_5(%arg0: i32) -> (i32, i32) {
    %c0_i32 = arith.constant 0 : i32
    %c0_i32_0 = arith.constant 0 : i32
    %c0_i32_1 = arith.constant 0 : i32
    return %c0_i32, %c0_i32_0 : i32, i32
  }
  func.func @transform_6(%arg0: i32) -> (i32, i32) {
    %c0_i32 = arith.constant 0 : i32
    %c0_i32_0 = arith.constant 0 : i32
    %c0_i32_1 = arith.constant 0 : i32
    return %c0_i32, %c0_i32_0 : i32, i32
  }
  func.func @transform_7(%arg0: i32) -> (i32, i32) {
    %c0_i32 = arith.constant 0 : i32
    %c0_i32_0 = arith.constant 0 : i32
    %c0_i32_1 = arith.constant 0 : i32
    return %c0_i32, %c0_i32_0 : i32, i32
  }
  func.func @transform_8(%arg0: i32) -> (i32, i32) {
    %c0_i32 = arith.constant 0 : i32
    %c0_i32_0 = arith.constant 0 : i32
    %c0_i32_1 = arith.constant 0 : i32
    return %c0_i32, %c0_i32_0 : i32, i32
  }
  func.func @transform_9(%arg0: i32) -> (i32, i32, i32) {
    %c0_i32 = arith.constant 0 : i32
    %c0_i32_0 = arith.constant 0 : i32
    %c0_i32_1 = arith.constant 0 : i32
    return %arg0, %c0_i32, %c0_i32_0 : i32, i32, i32
  }
}

</mosaic_0001>

<bundles_post_ra>
// kernel: mini_res_block.1
= control target key start
LH: loop header
LB: loop body
LE: loop exit
PB: predicated region body
PF: predicated region fallthrough
CT: control target
= control target key end

     0   :  { %s1508_s30 = smov 0   ;;  %s2075_s0 = inlined_call_operand.vmem [shape: f32[2,16,64], index: 0, kind: input, shape index: {}]   ;;  %s2076_s1 = inlined_call_operand.vmem [shape: f32[9,64], index: 1, kind: input, shape index: {}]   ;;  %s2077_s2 = inlined_call_operand.vmem [shape: f32[11,128], index: 2, kind: input, shape index: {}]   ;;  %s2078_s3 = inlined_call_operand.vmem [shape: f32[1,128], index: 3, kind: input, shape index: {}]   ;;  %s2079_s4 = inlined_call_operand.vmem [shape: f32[9,128], index: 4, kind: input, shape index: {}]   ;;  %s2080_s5 = inlined_call_operand.vmem [shape: f32[15,128], index: 5, kind: input, shape index: {}]   ;;  %s2081_s6 = inlined_call_operand.vmem [shape: f32[1,128], index: 6, kind: input, shape index: {}]   ;;  %s2082_s7 = inlined_call_operand.vmem [shape: f32[11,128], index: 7, kind: input, shape index: {}]   ;;  %s2083_s8 = inlined_call_operand.vmem [shape: f32[1,128], index: 8, kind: input, shape index: {}]   ;;  %s2084_s9 = inlined_call_operand.vmem [shape: f32[2,16,128], index: 9, kind: output, shape index: {}]  }
   0x1 LB: > { %s1341_s10 = sadd.s32 4294967295, %s1444_s30   ;;  %p1345_p0 = scmp.ge.s32.totalorder %s1444_s30, 1  ;;  %s1444_s30 = sphi %s1508_s30, %s19_s30  }
   0x2   : > { %p287_p1 = scmp.lt.s32.totalorder %s1444_s30, 3 }
   0x4   : > { %p288_p2 = pnand %p1345_p0, %p287_p1 }
   0x5   : > { %p323_p3 = scmp.lt.s32.totalorder (!%p288_p2), %s1341_s10, 1  ;;  %s1446_s13 = smov (!%p288_p2), 1  }
   0x6   : > { %291 = sbr.rel (%p288_p2) target bundleno = 976 (0x3d0), region = 56  ;;  %s1447_s18 = smov (!%p288_p2), 2  }
   0x7   : > { %s1449_s21 = smov (!%p288_p2), 126   ;;  %s1450_s22 = smov (!%p288_p2), 127  }
   0x8   : > { %s1451_s23 = smov (!%p288_p2), 80   ;;  %s1452_s24 = smov (!%p288_p2), 96  }
   0x9   : > { %s2086_s25 = smov (!%p288_p2), 112   ;;  %s1454_s26 = smov (!%p288_p2), 16  }
   0xa   : > { %s1455_s27 = smov (!%p288_p2), 32   ;;  %s1456_s28 = smov (!%p288_p2), 48  }
   0xb   : > { %v1519_v0 = vld [vmem:[%s2076_s1] sm:$0xff]  ;;  %s2093_s10 = smov (!%p323_p3, %s1341_s10), 1  ;;  %v1378_v7 = vld [vmem:[%s2076_s1 + $0x8] ss:$0 sm:$0xff]  ;;  %vm339_vm0 = vcmask 539648   ;;  %v1448_v9 = vmov 0.0  }
   0xc   : > { %v363_v1 = vperm.slane %v1519_v0, 1  ;;  %v414_v2 = vperm.slane %v1519_v0, 4  ;;  %s2085_s14 = sshll.u32 %s2093_s10, 4  ;;  %v380_v4 = vperm.slane %v1519_v0, 2  ;;  %v438_v5 = vperm.slane %v1519_v0, 5  ;;  %340 = vst.msk [vmem:[#allocation2] sm:$0xff] %vm339_vm0, %v1448_v9 }
   0xd   : > { %s1533_s17 = scalar_lea.vmem %s2075_s0, %s2085_s14  ;;  %v479_v8 = vperm.slane %v1519_v0, 7  ;;  %341 = vst.msk [vmem:[#allocation2 + $0x8] sm:$0xff] %vm339_vm0, %v1448_v9  ;;  %vm342_vm1 = vcmask 533504   ;;  %vm352_vm2 = vcmask 531464   ;;  %v397_v22 = vperm.slane %v1519_v0, 3  ;;  %s1457_s29 = smov 64  }
   0xe   : > { %365 = vrot.lane.b32.xlu1 %v363_v1, %s1446_s13  ;;  %416 = vrot.lane.b32.xlu2 %v414_v2, %s1446_s13  ;;  %v337_v3 = vld [vmem:[%s1533_s17] sm:$0xff]  ;;  %v338_v6 = vld [vmem:[%s1533_s17 + $0x8] sm:$0xff]  ;;  %804 = vst [vmem:[#allocation3] sm:$0xff] %v1448_v9  ;;  %v462_v23 = vperm.slane %v1519_v0, 6  ;;  %vm404_vm3 = vcmask 1046528   ;;  %vm469_vm4 = vcmask 1045504  }
   0xf   : > { %346 = vrot.lane.b32.xlu0 %v337_v3, %s1446_s13  ;;  %807 = vst [vmem:[#allocation3 + $0x10] sm:$0xff] %v1448_v9  ;;  %vm527_vm5 = vcmask 523264   ;;  %vm814_vm14 = vcmask 1040384   ;;  %vm805_vm15 = vcmask 15360   ;;  %vm810_vm0 = vcmask 9216  }
  0x10   : > { %809 = vst [vmem:[#allocation3 + $0x20] sm:$0x3] %v1448_v9 }
  0x11   : > { %343 = vst.msk [vmem:[#allocation2 + $0x10] sm:$0x3] %vm342_vm1, %v1448_v9  ;;  %vm831_vm1 = vcmask 1047560  }
  0x12   : > { %808 = vst.msk [vmem:[#allocation3 + $0x18] sm:$0xff] %vm805_vm15, %v1448_v9 }
  0x13   : > { %806 = vst.msk [vmem:[#allocation3 + $0x8] sm:$0xff] %vm805_vm15, %v1448_v9 }
  0x14   : > { %811 = vst.msk [vmem:[#allocation3 + $0x28] sm:$0x3] %vm810_vm0, %v1448_v9 }
  0x16   : > { %382 = vrot.lane.b32.xlu1 %v380_v4, %s1447_s18  ;;  %440 = vrot.lane.b32.xlu2 %v438_v5, %s1447_s18 }
  0x17   : > { %348 = vrot.lane.b32.xlu0 %v338_v6, %s1446_s13 }
  0x1e   : > { %505 = vrot.lane.b32.xlu1 %v1378_v7, %s1447_s18 }
  0x1f   : > { %481 = vrot.lane.b32.xlu0 %v479_v8, %s1446_s13 }
  0x68   : > { %v417_v12 = vpop.permute.xlu2 %416 }
  0x70   : > { %v441_v18 = vpop.permute.xlu2 %440 }
  0x80   : > { %v366_v10 = vpop.permute.xlu1 %365 }
  0x81   : > { %v347_v11 = vpop.permute.xlu0 %346 }
  0x82   : > { %353 = vst.msk [vmem:[#allocation2 + $0x1] sm:$0xff] %vm352_vm2, %v347_v11 }
  0x88   : > { %v383_v13 = vpop.permute.xlu1 %382 }
  0x89   : > { %v1555_v14 = vld [vmem:[#allocation2] sm:$0xff]  ;;  %v349_v15 = vpop.permute.xlu0 %348 }
  0x8a   : > { %v385_v16 = vmul.f32 %v383_v13, %v1555_v14  ;;  %354 = vst.msk [vmem:[#allocation2 + $0x9] sm:$0xff] %vm352_vm2, %v349_v15  ;;  %v368_v17 = vmul.f32 %v366_v10, %v1555_v14  ;;  %v443_v20 = vmul.f32 %v441_v18, %v1555_v14  ;;  %v419_v27 = vmul.f32 %v417_v12, %v1555_v14 }
  0x8b   : > { %v398_v32 = vmul.f32 %v397_v22, %v1555_v14  ;;  %v463_v33 = vmul.f32 %v462_v23, %v1555_v14  ;;  %vm833_vm2 = vcmask 7168  }
  0x8c   : > { %389 = vrot.lane.b32.xlu1 %v385_v16, %s1449_s21  ;;  %372 = vrot.lane.b32.xlu2 %v368_v17, %s1450_s22  ;;  %v449_v34 = vrot.slane %v443_v20, 1  ;;  %v425_v36 = vrot.slane %v419_v27, 1 }
  0x8d   : > { %v405_v47 = vrot.slane %v398_v32, 1  ;;  %v470_v48 = vrot.slane %v463_v33, 2 }
  0x90   : > { %v506_v61 = vpop.permute.xlu1 %505 }
  0x91   : > { %v1561_v19 = vld [vmem:[#allocation2 + $0x8] sm:$0xff]  ;;  %v357_v21 = vld [vmem:[#allocation2 + $0x10] sm:$0x3]  ;;  %v482_v28 = vpop.permute.xlu0 %481  ;;  %v508_v8 = vmul.f32 %v506_v61, %v1555_v14 }
  0x92   : > { %v386_v24 = vmul.f32 %v383_v13, %v1561_v19  ;;  %v369_v25 = vmul.f32 %v366_v10, %v1561_v19  ;;  %v420_v26 = vmul.f32 %v417_v12, %v1561_v19  ;;  %v421_v29 = vmul.f32 %v417_v12, %v357_v21 }
  0x93   : > { %v444_v31 = vmul.f32 %v441_v18, %v1561_v19  ;;  %v484_v37 = vmul.f32 %v482_v28, %v1555_v14  ;;  %v400_v39 = vmul.f32 %v397_v22, %v357_v21  ;;  %v399_v40 = vmul.f32 %v397_v22, %v1561_v19 }
  0x94   : > { %391 = vrot.lane.b32.xlu2 %v386_v24, %s1449_s21  ;;  %374 = vrot.lane.b32.xlu0 %v369_v25, %s1450_s22  ;;  %v426_v30 = vrot.slane %v420_v26, 1  ;;  %v428_v35 = vrot.slane %v421_v29, 1  ;;  %v485_v41 = vmul.f32 %v482_v28, %v1561_v19  ;;  %v464_v43 = vmul.f32 %v462_v23, %v1561_v19 }
  0x95   : > { %v450_v38 = vrot.slane %v444_v31, 1  ;;  %v465_v44 = vmul.f32 %v462_v23, %v357_v21  ;;  %v408_v45 = vrot.slane %v400_v39, 1  ;;  %v406_v46 = vrot.slane %v399_v40, 1 }
  0x96   : > { %v429_v42 = vsel %vm404_vm3, %v426_v30, %v428_v35  ;;  %v486_v49 = vmul.f32 %v482_v28, %v357_v21  ;;  %v445_v50 = vmul.f32 %v441_v18, %v357_v21  ;;  %v471_v51 = vrot.slane %v464_v43, 2 }
  0x97   : > { %432 = vrot.lane.b32.xlu1 %v429_v42, %s1450_s22  ;;  %v473_v52 = vrot.slane %v465_v44, 2  ;;  %v451_v53 = vsel %vm404_vm3, %v449_v34, %v450_v38  ;;  %v427_v54 = vsel %vm404_vm3, %v425_v36, %v426_v30  ;;  %v409_v55 = vsel %vm404_vm3, %v406_v46, %v408_v45 }
  0x98   : > { %v407_v56 = vsel %vm404_vm3, %v405_v47, %v406_v46  ;;  %v490_v57 = vrot.slane %v484_v37, 2  ;;  %v491_v58 = vrot.slane %v485_v41, 2  ;;  %v472_v59 = vsel %vm469_vm4, %v470_v48, %v471_v51 }
  0x99   : > { %v474_v60 = vsel %vm469_vm4, %v471_v51, %v473_v52  ;;  %v493_v62 = vrot.slane %v486_v49, 2  ;;  %v452_v63 = vrot.slane %v445_v50, 1  ;;  %v509_v1 = vmul.f32 %v506_v61, %v1561_v19  ;;  %v1379_v50 = vld [vmem:[%s2077_s2] ss:$0 sm:$0xff]  ;;  %v1381_v51 = vld [vmem:[%s2077_s2 + $0x1] ss:$0 sm:$0xff] }
  0x9a   : > { %v510_v2 = vmul.f32 %v506_v61, %v357_v21  ;;  %v492_v3 = vsel %vm469_vm4, %v490_v57, %v491_v58  ;;  %v514_v11 = vrot.slane %v508_v8, 2  ;;  %v358_v13 = vperm.slane %v1519_v0, 0  ;;  %v1385_v52 = vld [vmem:[%s2077_s2 + $0x2] ss:$0 sm:$0xff] }
  0x9b   : > { %v453_v4 = vsel %vm404_vm3, %v450_v38, %v452_v63  ;;  %v494_v5 = vsel %vm469_vm4, %v491_v58, %v493_v62  ;;  %v515_v6 = vrot.slane %v509_v1, 2  ;;  %v1390_v1 = vld [vmem:[%s2079_s4 + $0x8] ss:$0 sm:$0xff] }
  0x9c   : > { %454 = vrot.lane.b32.xlu2 %v451_v53, %s1449_s21  ;;  %430 = vrot.lane.b32.xlu0 %v427_v54, %s1450_s22  ;;  %v517_v7 = vrot.slane %v510_v2, 2  ;;  %v359_v16 = vmul.f32 %v358_v13, %v1555_v14  ;;  %v360_v22 = vmul.f32 %v358_v13, %v1561_v19  ;;  %v1645_v53 = vld [vmem:[%s2079_s4] sm:$0xff] }
  0x9d   : > { %v516_v12 = vsel %vm469_vm4, %v514_v11, %v515_v6  ;;  %v878_v57 = vperm.slane %v1645_v53, 2  ;;  %v963_v2 = vperm.slane %v1645_v53, 5 }
  0x9e   : > { %v518_v10 = vsel %vm469_vm4, %v515_v6, %v517_v7  ;;  %v1020_v6 = vperm.slane %v1645_v53, 7 }
  0x9f   : > { %495 = vrot.lane.b32.xlu1 %v492_v3, %s1450_s22 }
  0xa4   : > { %456 = vrot.lane.b32.xlu0 %v453_v4, %s1449_s21  ;;  %497 = vrot.lane.b32.xlu2 %v494_v5, %s1450_s22  ;;  %v1386_v4 = vld [vmem:[%s2077_s2 + $0x3] ss:$0 sm:$0xff] }
  0xa7   : > { %521 = vrot.lane.b32.xlu1 %v518_v10, %s1449_s21  ;;  %v1383_v10 = vld [vmem:[%s2077_s2 + $0x4] ss:$0 sm:$0xff] }
  0xac   : > { %519 = vrot.lane.b32.xlu0 %v516_v12, %s1449_s21 }
  0xe6   : > { %v373_v15 = vpop.permute.xlu2 %372 }
  0xe7   : > { %v378_v17 = vadd.f32 %v373_v15, %v359_v16  ;;  %v1384_v16 = vld [vmem:[%s2077_s2 + $0x5] ss:$0 sm:$0xff] }
  0xee   : > { %v392_v23 = vpop.permute.xlu2 %391 }
  0xf6   : > { %v455_v31 = vpop.permute.xlu2 %454 }
  0xfe   : > { %v390_v18 = vpop.permute.xlu1 %389  ;;  %v498_v37 = vpop.permute.xlu2 %497 }
  0xff   : > { %v395_v20 = vadd.f32 %v390_v18, %v378_v17 }
 0x101   : > { %v412_v21 = vadd.f32 %v407_v56, %v395_v20  ;;  %v850_v56 = vperm.slane %v1645_v53, 1 }
 0x106   : > { %v375_v24 = vpop.permute.xlu0 %374 }
 0x107   : > { %v379_v25 = vadd.f32 %v375_v24, %v360_v22  ;;  %v1389_v22 = vld [vmem:[%s2077_s2 + $0x6] ss:$0 sm:$0xff] }
 0x109   : > { %v396_v26 = vadd.f32 %v392_v23, %v379_v25  ;;  %v433_v27 = vpop.permute.xlu1 %432  ;;  %v1388_v23 = vld [vmem:[%s2077_s2 + $0x7] ss:$0 sm:$0xff] }
 0x10b   : > { %v413_v28 = vadd.f32 %v409_v55, %v396_v26  ;;  %v922_v55 = vperm.slane %v1645_v53, 4 }
 0x10d   : > { %v437_v34 = vadd.f32 %v433_v27, %v413_v28 }
 0x10e   : > { %v431_v29 = vpop.permute.xlu0 %430 }
 0x10f   : > { %v436_v30 = vadd.f32 %v431_v29, %v412_v21  ;;  %v1380_v29 = vld [vmem:[%s2077_s2 + $0x8] ss:$0 sm:$0xff] }
 0x111   : > { %v460_v32 = vadd.f32 %v455_v31, %v436_v30  ;;  %v496_v0 = vpop.permute.xlu1 %495 }
 0x113   : > { %v477_v33 = vadd.f32 %v472_v59, %v460_v32 }
 0x115   : > { %v501_v39 = vadd.f32 %v496_v0, %v477_v33 }
 0x116   : > { %v457_v14 = vpop.permute.xlu0 %456 }
 0x117   : > { %v461_v35 = vadd.f32 %v457_v14, %v437_v34 }
 0x119   : > { %v478_v36 = vadd.f32 %v474_v60, %v461_v35  ;;  %v522_v19 = vpop.permute.xlu1 %521 }
 0x11b   : > { %v502_v38 = vadd.f32 %v498_v37, %v478_v36  ;;  %v1382_v36 = vld [vmem:[%s2077_s2 + $0x9] ss:$0 sm:$0xff] }
 0x11d   : > { %v526_v40 = vadd.f32 %v522_v19, %v502_v38  ;;  %v1387_v38 = vld [vmem:[%s2077_s2 + $0xa] ss:$0 sm:$0xff] }
 0x11e   : > { %v520_v41 = vpop.permute.xlu0 %519 }
 0x11f   : > { %v1605_v42 = vsel %vm527_vm5, %v526_v40, 0.0  ;;  %v525_v43 = vadd.f32 %v520_v41, %v501_v39 }
 0x120   : > { %534 = vrot.lane.b32.xlu0 %v1605_v42, %s1451_s23  ;;  %v571_v24 = vmul.f32 %v1386_v4, %v1605_v42 }
 0x121   : > { %v528_v44 = vsel %vm527_vm5, %v525_v43, 0.0 }
 0x122   : > { %544 = vrot.lane.b32.xlu1 %v528_v44, %s1452_s24  ;;  %532 = vrot.lane.b32.xlu2 %v528_v44, %s1451_s23  ;;  %v570_v11 = vmul.f32 %v1386_v4, %v528_v44 }
 0x128   : > { %556 = vrot.lane.b32.xlu0 %v528_v44, %s2086_s25 }
 0x12a   : > { %558 = vrot.lane.b32.xlu1 %v1605_v42, %s2086_s25  ;;  %546 = vrot.lane.b32.xlu2 %v1605_v42, %s1452_s24 }
 0x130   : > { %576 = vrot.lane.b32.xlu0 %v1605_v42, %s1454_s26 }
 0x132   : > { %586 = vrot.lane.b32.xlu1 %v528_v44, %s1455_s27  ;;  %574 = vrot.lane.b32.xlu2 %v528_v44, %s1454_s26 }
 0x138   : > { %598 = vrot.lane.b32.xlu0 %v528_v44, %s1456_s28 }
 0x13a   : > { %600 = vrot.lane.b32.xlu1 %v1605_v42, %s1456_s28  ;;  %588 = vrot.lane.b32.xlu2 %v1605_v42, %s1455_s27 }
 0x140   : > { %612 = vrot.lane.b32.xlu0 %v1605_v42, %s1457_s29 }
 0x142   : > { %610 = vrot.lane.b32.xlu2 %v528_v44, %s1457_s29  ;;  %852 = vrot.lane.b32.xlu1 %v850_v56, %s1446_s13 }
 0x148   : > { %924 = vrot.lane.b32.xlu0 %v922_v55, %s1446_s13 }
 0x14a   : > { %880 = vrot.lane.b32.xlu2 %v878_v57, %s1447_s18  ;;  %965 = vrot.lane.b32.xlu1 %v963_v2, %s1447_s18 }
 0x150   : > { %1063 = vrot.lane.b32.xlu0 %v1390_v1, %s1447_s18 }
 0x152   : > { %1022 = vrot.lane.b32.xlu2 %v1020_v6, %s1446_s13 }
 0x17c   : > { %v533_v45 = vpop.permute.xlu2 %532 }
 0x17d   : > { %v540_v60 = vmul.f32 %v1379_v50, %v533_v45  ;;  %v624_v35 = vmul.f32 %v1380_v29, %v533_v45  ;;  %v1391_v45 = vld [vmem:[%s2078_s3] ss:$0 sm:$0xff] }
 0x184   : > { %v1629_v46 = vpop.permute.xlu2 %546 }
 0x185   : > { %v553_v8 = vmul.f32 %v1381_v51, %v1629_v46  ;;  %v631_v57 = vmul.f32 %v1382_v36, %v1629_v46 }
 0x18c   : > { %v575_v49 = vpop.permute.xlu2 %574 }
 0x18d   : > { %v582_v18 = vmul.f32 %v1383_v10, %v575_v49 }
 0x192   : > { %v1631_v47 = vpop.permute.xlu0 %534 }
 0x193   : > { %v541_v3 = vmul.f32 %v1379_v50, %v1631_v47 }
 0x194   : > { %v545_v48 = vpop.permute.xlu1 %544  ;;  %v589_v63 = vpop.permute.xlu2 %588 }
 0x195   : > { %v552_v58 = vmul.f32 %v1381_v51, %v545_v48  ;;  %v555_v15 = vadd.f32 %v553_v8, %v541_v3  ;;  %v595_v37 = vmul.f32 %v1384_v16, %v589_v63  ;;  %v630_v40 = vmul.f32 %v1382_v36, %v545_v48 }
 0x197   : > { %v554_v62 = vadd.f32 %v552_v58, %v540_v60 }
 0x19a   : > { %v557_v54 = vpop.permute.xlu0 %556 }
 0x19b   : > { %v564_v61 = vmul.f32 %v1385_v52, %v557_v54  ;;  %v636_v44 = vmul.f32 %v1387_v38, %v557_v54 }
 0x19c   : > { %v1650_v59 = vpop.permute.xlu1 %558  ;;  %v611_v27 = vpop.permute.xlu2 %610 }
 0x19d   : > { %v566_v5 = vadd.f32 %v564_v61, %v554_v62  ;;  %v565_v12 = vmul.f32 %v1385_v52, %v1650_v59  ;;  %v618_v33 = vmul.f32 %v1388_v23, %v611_v27  ;;  %v625_v52 = vmul.f32 %v1380_v29, %v1631_v47 }
 0x19e   : > { %v637_v48 = vmul.f32 %v1387_v38, %v1650_v59 }
 0x19f   : > { %v572_v17 = vadd.f32 %v570_v11, %v566_v5  ;;  %v567_v20 = vadd.f32 %v565_v12, %v555_v15 }
 0x1a1   : > { %v584_v26 = vadd.f32 %v582_v18, %v572_v17  ;;  %v573_v30 = vadd.f32 %v571_v24, %v567_v20 }
 0x1a2   : > { %v577_v7 = vpop.permute.xlu0 %576 }
 0x1a3   : > { %v583_v25 = vmul.f32 %v1383_v10, %v577_v7 }
 0x1a4   : > { %v587_v13 = vpop.permute.xlu1 %586 }
 0x1a5   : > { %v594_v21 = vmul.f32 %v1384_v16, %v587_v13  ;;  %v585_v34 = vadd.f32 %v583_v25, %v573_v30 }
 0x1a7   : > { %v596_v31 = vadd.f32 %v594_v21, %v584_v26  ;;  %v597_v42 = vadd.f32 %v595_v37, %v585_v34 }
 0x1aa   : > { %v599_v28 = vpop.permute.xlu0 %598 }
 0x1ab   : > { %v606_v32 = vmul.f32 %v1389_v22, %v599_v28 }
 0x1ac   : > { %v601_v0 = vpop.permute.xlu1 %600 }
 0x1ad   : > { %v608_v14 = vadd.f32 %v606_v32, %v596_v31  ;;  %v607_v39 = vmul.f32 %v1389_v22, %v601_v0  ;;  %v881_v31 = vpop.permute.xlu2 %880 }
 0x1af   : > { %v620_v19 = vadd.f32 %v618_v33, %v608_v14  ;;  %v609_v50 = vadd.f32 %v607_v39, %v597_v42 }
 0x1b1   : > { %v626_v41 = vadd.f32 %v624_v35, %v620_v19 }
 0x1b2   : > { %v613_v43 = vpop.permute.xlu0 %612 }
 0x1b3   : > { %v632_v49 = vadd.f32 %v630_v40, %v626_v41  ;;  %v619_v51 = vmul.f32 %v1388_v23, %v613_v43  ;;  %v906_v43 = vperm.slane %v1645_v53, 3 }
 0x1b4   : > { %v853_v0 = vpop.permute.xlu1 %852 }
 0x1b5   : > { %v621_v55 = vadd.f32 %v619_v51, %v609_v50  ;;  %v638_v56 = vadd.f32 %v636_v44, %v632_v49  ;;  %v1703_v32 = vpop.permute.xlu2 %1022  ;;  %v1004_v44 = vperm.slane %v1645_v53, 6 }
 0x1b7   : > { %v627_v58 = vadd.f32 %v625_v52, %v621_v55  ;;  %v644_v60 = vadd.f32 %v1391_v45, %v638_v56 }
 0x1b9   : > { %v633_v61 = vadd.f32 %v631_v57, %v627_v58  ;;  %v1350_v62 = vmul.f32 -1.442695, %v644_v60 }
 0x1ba   : > { %v925_v34 = vpop.permute.xlu0 %924 }
 0x1bb   : > { %1420 = vpow2.f32 %v1350_v62  ;;  %v639_v54 = vadd.f32 %v637_v48, %v633_v61 }
 0x1bc   : > { %v1705_v14 = vpop.permute.xlu1 %965 }
 0x1bd   : > { %v645_v63 = vadd.f32 %v1391_v45, %v639_v54 }
 0x1bf   : > { %v1351_v1 = vmul.f32 -1.442695, %v645_v63 }
 0x1c1   : > { %v1421_v2 = vpop.eup %1420  ;;  %1422 = vpow2.f32 %v1351_v1 }
 0x1c2   : > { %v652_v3 = vadd.f32 1.0, %v1421_v2  ;;  %v1707_v35 = vpop.permute.xlu0 %1063 }
 0x1c4   : > { %1424 = vrcp.f32 %v652_v3  ;;  %v665_v7 = vand.u32 2147483648, %v652_v3  ;;  %v663_v59 = vand.u32 2147483647, %v652_v3  ;;  %vm659_vm7 = vweird.f32 %v652_v3 }
 0x1c6   : > { %v666_v13 = vor.u32 1.1754944e-38, %v665_v7  ;;  %vm664_vm9 = vcmp.eq.f32.partialorder %v663_v59, 8.507059e+37 }
 0x1c7   : > { %v1423_v4 = vpop.eup %1422 }
 0x1c8   : > { %v653_v47 = vadd.f32 1.0, %v1423_v4 }
 0x1ca   : > { %v1425_v5 = vpop.eup %1424  ;;  %1426 = vrcp.f32 %v653_v47  ;;  %v680_v18 = vand.u32 2147483648, %v653_v47  ;;  %v678_v22 = vand.u32 2147483647, %v653_v47  ;;  %vm674_vm11 = vweird.f32 %v653_v47 }
 0x1cb   : > { %v655_v6 = vmul.f32 %v1425_v5, %v652_v3  ;;  %vm660_vm6 = vweird.f32 %v1425_v5 }
 0x1cc   : > { %vm661_vm8 = vmor %vm659_vm7, %vm660_vm6  ;;  %v681_v25 = vor.u32 1.1754944e-38, %v680_v18  ;;  %vm679_vm13 = vcmp.eq.f32.partialorder %v678_v22, 8.507059e+37  ;;  %vm827_vm6 = vcmask 1047561   ;;  %vm829_vm7 = vcmask 7169  }
 0x1cd   : > { %v656_v46 = vsub.f32 1.0, %v655_v6 }
 0x1cf   : > { %v657_v8 = vmul.f32 %v1425_v5, %v656_v46 }
 0x1d0   : > { %v1427_v10 = vpop.eup %1426 }
 0x1d1   : > { %v658_v11 = vadd.f32 %v1425_v5, %v657_v8  ;;  %v670_v12 = vmul.f32 %v1427_v10, %v653_v47  ;;  %vm675_vm10 = vweird.f32 %v1427_v10 }
 0x1d2   : > { %vm676_vm12 = vmor %vm674_vm11, %vm675_vm10  ;;  %vm899_vm10 = vcmask 1031168  }
 0x1d3   : > { %v662_v15 = vsel %vm661_vm8, %v1425_v5, %v658_v11  ;;  %v671_v16 = vsub.f32 1.0, %v670_v12  ;;  %vm835_vm8 = vcmask 1040392  }
 0x1d4   : > { %v667_v17 = vsel %vm664_vm9, %v666_v13, %v662_v15  ;;  %vm837_vm9 = vcmask 0  }
 0x1d5   : > { %v684_v20 = vmul.f32 %v667_v17, %v644_v60  ;;  %v672_v21 = vmul.f32 %v1427_v10, %v671_v16 }
 0x1d7   : > { %v815_v23 = vrot.slane %v684_v20, 7  ;;  %v673_v24 = vadd.f32 %v1427_v10, %v672_v21 }
 0x1d9   : > { %818 = vrot.lane.b32.xlu1 %v815_v23, %s1446_s13  ;;  %v677_v26 = vsel %vm676_vm12, %v1427_v10, %v673_v24 }
 0x1da   : > { %v682_v27 = vsel %vm679_vm13, %v681_v25, %v677_v26 }
 0x1db   : > { %v685_v28 = vmul.f32 %v682_v27, %v645_v63 }
 0x1dd   : > { %v816_v29 = vrot.slane %v685_v28, 7 }
 0x1df   : > { %822 = vrot.lane.b32.xlu0 %v816_v29, %s1446_s13  ;;  %v817_v30 = vsel %vm814_vm14, %v815_v23, %v816_v29 }
 0x1e0   : > { %820 = vrot.lane.b32.xlu2 %v817_v30, %s1446_s13  ;;  %s2088_s13 = smov 112  }
 0x23a   : > { %v821_v33 = vpop.permute.xlu2 %820 }
 0x23b   : > { %832 = vst.msk [vmem:[#allocation3 + $0x10] sm:$0xff] %vm831_vm1, %v821_v33 }
 0x23c   : > { %834 = vst.msk [vmem:[#allocation3 + $0x18] sm:$0xff] %vm833_vm2, %v821_v33 }
 0x242   : > { %v1721_v42 = vld [vmem:[#allocation3 + $0x10] sm:$0xff] }
 0x243   : > { %v1719_v41 = vld [vmem:[#allocation3 + $0x18] sm:$0xff]  ;;  %v857_v51 = vmul.f32 %v853_v0, %v1721_v42  ;;  %v908_v55 = vmul.f32 %v906_v43, %v1721_v42  ;;  %v1006_v56 = vmul.f32 %v1004_v44, %v1721_v42  ;;  %v929_v57 = vmul.f32 %v925_v34, %v1721_v42 }
 0x244   : > { %v858_v49 = vmul.f32 %v853_v0, %v1719_v41  ;;  %v886_v5 = vmul.f32 %v881_v31, %v1719_v41  ;;  %v885_v6 = vmul.f32 %v881_v31, %v1721_v42  ;;  %v930_v16 = vmul.f32 %v925_v34, %v1719_v41 }
 0x245   : > { %v914_v63 = vrot.slane %v908_v55, 1  ;;  %v1012_v4 = vrot.slane %v1006_v56, 2  ;;  %v940_v46 = vrot.slane %v929_v57, 1  ;;  %v970_v28 = vmul.f32 %v1705_v14, %v1721_v42 }
 0x246   : > { %v943_v21 = vrot.slane %v930_v16, 1  ;;  %v971_v29 = vmul.f32 %v1705_v14, %v1719_v41 }
 0x247   : > { %v981_v33 = vrot.slane %v970_v28, 1 }
 0x24b   : > { %v819_v36 = vpop.permute.xlu1 %818 }
 0x24c   : > { %828 = vst.msk [vmem:[#allocation3] sm:$0xfe] %vm827_vm6, %v819_v36 }
 0x24d   : > { %830 = vst.msk [vmem:[#allocation3 + $0x8] sm:$0xfe] %vm829_vm7, %v819_v36 }
 0x251   : > { %v823_v9 = vpop.permute.xlu0 %822 }
 0x252   : > { %836 = vst.msk [vmem:[#allocation3 + $0x20] sm:$0x1] %vm835_vm8, %v823_v9 }
 0x253   : > { %838 = vst.msk [vmem:[#allocation3 + $0x28] sm:$0x1] %vm837_vm9, %v823_v9  ;;  %v1709_v37 = vld [vmem:[#allocation3] sm:$0xff] }
 0x254   : > { %v855_v38 = vmul.f32 %v853_v0, %v1709_v37  ;;  %v1712_v19 = vld [vmem:[#allocation3 + $0x8] sm:$0xff]  ;;  %v883_v50 = vmul.f32 %v881_v31, %v1709_v37  ;;  %v927_v45 = vmul.f32 %v925_v34, %v1709_v37  ;;  %v907_v58 = vmul.f32 %v906_v43, %v1709_v37 }
 0x255   : > { %v884_v39 = vmul.f32 %v881_v31, %v1712_v19  ;;  %v856_v40 = vmul.f32 %v853_v0, %v1712_v19  ;;  %v1005_v48 = vmul.f32 %v1004_v44, %v1709_v37  ;;  %v928_v8 = vmul.f32 %v925_v34, %v1712_v19 }
 0x256   : > { %863 = vrot.lane.b32.xlu1 %v855_v38, %s1450_s22  ;;  %v939_v62 = vrot.slane %v927_v45, 1  ;;  %v913_v54 = vrot.slane %v907_v58, 1  ;;  %v968_v23 = vmul.f32 %v1705_v14, %v1709_v37  ;;  %v969_v27 = vmul.f32 %v1705_v14, %v1712_v19 }
 0x257   : > { %893 = vrot.lane.b32.xlu0 %v884_v39, %s1449_s21  ;;  %865 = vrot.lane.b32.xlu2 %v856_v40, %s1450_s22  ;;  %v1011_v3 = vrot.slane %v1005_v48, 2  ;;  %v942_v17 = vrot.slane %v928_v8, 1  ;;  %v1026_v40 = vmul.f32 %v1703_v32, %v1712_v19  ;;  %v1066_v48 = vmul.f32 %v1707_v35, %v1709_v37 }
 0x258   : > { %v1746_v7 = vsel %vm404_vm3, %v913_v54, %v914_v63  ;;  %v941_v12 = vsel %vm404_vm3, %v939_v62, %v940_v46  ;;  %v980_v30 = vrot.slane %v968_v23, 1  ;;  %v983_v0 = vrot.slane %v969_v27, 1 }
 0x259   : > { %v1730_v52 = vld [vmem:[#allocation3 + $0x20] sm:$0x3]  ;;  %v1753_v10 = vsel %vm469_vm4, %v1011_v3, %v1012_v4  ;;  %v944_v22 = vsel %vm404_vm3, %v942_v17, %v943_v21  ;;  %v1068_v62 = vmul.f32 %v1707_v35, %v1721_v42  ;;  %v1069_v8 = vmul.f32 %v1707_v35, %v1719_v41 }
 0x25a   : > { %v909_v60 = vmul.f32 %v906_v43, %v1730_v52  ;;  %v1007_v61 = vmul.f32 %v1004_v44, %v1730_v52  ;;  %v1741_v1 = vld [vmem:[#allocation3 + $0x28] sm:$0x3]  ;;  %v931_v15 = vmul.f32 %v925_v34, %v1730_v52  ;;  %v972_v26 = vmul.f32 %v1705_v14, %v1730_v52 }
 0x25b   : > { %v932_v13 = vmul.f32 %v925_v34, %v1741_v1  ;;  %v984_v34 = vrot.slane %v971_v29, 1  ;;  %v982_v36 = vsel %vm404_vm3, %v980_v30, %v981_v33  ;;  %v973_v9 = vmul.f32 %v1705_v14, %v1741_v1 }
 0x25c   : > { %v916_v2 = vrot.slane %v909_v60, 1  ;;  %v1014_v47 = vrot.slane %v1007_v61, 2  ;;  %v945_v20 = vrot.slane %v931_v15, 1  ;;  %v986_v31 = vrot.slane %v972_v26, 1 }
 0x25d   : > { %v947_v18 = vrot.slane %v932_v13, 1  ;;  %v985_v39 = vsel %vm404_vm3, %v983_v0, %v984_v34  ;;  %v1025_v43 = vmul.f32 %v1703_v32, %v1709_v37  ;;  %v1028_v44 = vmul.f32 %v1703_v32, %v1719_v41 }
 0x25e   : > { %869 = vrot.lane.b32.xlu1 %v858_v49, %s1450_s22  ;;  %v1750_v59 = vsel %vm404_vm3, %v914_v63, %v916_v2  ;;  %v1756_v11 = vsel %vm469_vm4, %v1012_v4, %v1014_v47  ;;  %v946_v25 = vsel %vm404_vm3, %v940_v46, %v945_v20  ;;  %v987_v38 = vsel %vm404_vm3, %v981_v33, %v986_v31 }
 0x25f   : > { %891 = vrot.lane.b32.xlu2 %v883_v50, %s1449_s21  ;;  %867 = vrot.lane.b32.xlu0 %v857_v51, %s1450_s22  ;;  %v948_v24 = vsel %vm404_vm3, %v943_v21, %v947_v18  ;;  %v1027_v14 = vmul.f32 %v1703_v32, %v1721_v42  ;;  %v988_v49 = vrot.slane %v973_v9, 1  ;;  %v1040_v50 = vrot.slane %v1026_v40, 2 }
 0x260   : > { %v1037_v51 = vrot.slane %v1025_v43, 2  ;;  %v1041_v45 = vrot.slane %v1028_v44, 2  ;;  %v1029_v57 = vmul.f32 %v1703_v32, %v1730_v52  ;;  %v1030_v61 = vmul.f32 %v1703_v32, %v1741_v1 }
 0x261   : > { %v1038_v55 = vrot.slane %v1027_v14, 2  ;;  %v989_v56 = vsel %vm404_vm3, %v984_v34, %v988_v49  ;;  %v1078_v63 = vrot.slane %v1066_v48, 2  ;;  %v1079_v3 = vrot.slane %v1068_v62, 2 }
 0x262   : > { %v1042_v58 = vsel %vm469_vm4, %v1040_v50, %v1041_v45  ;;  %v1043_v54 = vrot.slane %v1029_v57, 2  ;;  %v1045_v2 = vrot.slane %v1030_v61, 2  ;;  %v1067_v47 = vmul.f32 %v1707_v35, %v1712_v19 }
 0x263   : > { %v1039_v60 = vsel %vm469_vm4, %v1037_v51, %v1038_v55  ;;  %v1080_v32 = vsel %vm469_vm4, %v1078_v63, %v1079_v3  ;;  %v1070_v46 = vmul.f32 %v1707_v35, %v1730_v52  ;;  %v1082_v15 = vrot.slane %v1069_v8, 2 }
 0x264   : > { %v1044_v4 = vsel %vm469_vm4, %v1038_v55, %v1043_v54  ;;  %v1081_v19 = vrot.slane %v1067_v47, 2  ;;  %v845_v18 = vperm.slane %v1645_v53, 0  ;;  %vm871_vm3 = vcmask 1039360  }
 0x265   : > { %v1084_v13 = vrot.slane %v1070_v46, 2  ;;  %v1436_v46 = vld [vmem:[%s1533_s17] sm:$0xff] }
 0x266   : > { %895 = vrot.lane.b32.xlu1 %v885_v6, %s1449_s21  ;;  %v1071_v6 = vmul.f32 %v1707_v35, %v1741_v1  ;;  %v1083_v16 = vsel %vm469_vm4, %v1081_v19, %v1082_v15  ;;  %v846_v41 = vmul.f32 %v845_v18, %v1709_v37  ;;  %v847_v30 = vmul.f32 %v845_v18, %v1721_v42  ;;  %v1437_v19 = vld [vmem:[%s1533_s17 + $0x8] sm:$0xff] }
 0x267   : > { %897 = vrot.lane.b32.xlu2 %v886_v5, %s1449_s21  ;;  %949 = vrot.lane.b32.xlu0 %v941_v12, %s1450_s22  ;;  %v1046_v5 = vsel %vm469_vm4, %v1041_v45, %v1045_v2  ;;  %v1085_v17 = vsel %vm469_vm4, %v1079_v3, %v1084_v13  ;;  %v1880_v8 = vsel %vm527_vm5, %v1436_v46, 0.0 }
 0x268   : > { %v1086_v12 = vrot.slane %v1071_v6, 2 }
 0x26a   : > { %v1087_v1 = vsel %vm469_vm4, %v1082_v15, %v1086_v12  ;;  %v1890_v12 = vsel %vm527_vm5, %v1437_v19, 0.0 }
 0x26e   : > { %951 = vrot.lane.b32.xlu1 %v944_v22, %s1450_s22 }
 0x26f   : > { %955 = vrot.lane.b32.xlu0 %v948_v24, %s1450_s22  ;;  %953 = vrot.lane.b32.xlu2 %v946_v25, %s1450_s22 }
 0x276   : > { %990 = vrot.lane.b32.xlu1 %v982_v36, %s1449_s21 }
 0x277   : > { %994 = vrot.lane.b32.xlu0 %v987_v38, %s1449_s21  ;;  %992 = vrot.lane.b32.xlu2 %v985_v39, %s1449_s21 }
 0x27e   : > { %996 = vrot.lane.b32.xlu1 %v989_v56, %s1449_s21 }
 0x27f   : > { %1049 = vrot.lane.b32.xlu0 %v1042_v58, %s1450_s22  ;;  %1047 = vrot.lane.b32.xlu2 %v1039_v60, %s1450_s22 }
 0x286   : > { %1051 = vrot.lane.b32.xlu1 %v1044_v4, %s1450_s22 }
 0x287   : > { %1088 = vrot.lane.b32.xlu0 %v1080_v32, %s1449_s21  ;;  %1053 = vrot.lane.b32.xlu2 %v1046_v5, %s1450_s22 }
 0x28e   : > { %1090 = vrot.lane.b32.xlu1 %v1083_v16, %s1449_s21 }
 0x28f   : > { %1094 = vrot.lane.b32.xlu0 %v1087_v1, %s1449_s21  ;;  %1092 = vrot.lane.b32.xlu2 %v1085_v17, %s1449_s21 }
 0x2b1   : > { %v866_v52 = vpop.permute.xlu2 %865 }
 0x2b9   : > { %v892_v22 = vpop.permute.xlu2 %891 }
 0x2c1   : > { %v898_v29 = vpop.permute.xlu2 %897 }
 0x2c8   : > { %v864_v35 = vpop.permute.xlu1 %863 }
 0x2c9   : > { %v872_v20 = vsel %vm871_vm3, %v864_v35, %v866_v52  ;;  %v894_v21 = vpop.permute.xlu0 %893  ;;  %v954_v9 = vpop.permute.xlu2 %953  ;;  %v1400_v35 = vld [vmem:[%s2080_s5 + $0x1] ss:$0 sm:$0xff] }
 0x2ca   : > { %v876_v23 = vadd.f32 %v872_v20, %v846_v41  ;;  %v900_v24 = vsel %vm899_vm10, %v892_v22, %v894_v21  ;;  %v1396_v41 = vld [vmem:[%s2080_s5] ss:$0 sm:$0xff] }
 0x2cc   : > { %v904_v25 = vadd.f32 %v900_v24, %v876_v23 }
 0x2ce   : > { %v920_v26 = vadd.f32 %v1746_v7, %v904_v25  ;;  %v1392_v25 = vld [vmem:[%s2080_s5 + $0x2] ss:$0 sm:$0xff] }
 0x2d0   : > { %v870_v27 = vpop.permute.xlu1 %869 }
 0x2d1   : > { %v868_v28 = vpop.permute.xlu0 %867  ;;  %v993_v40 = vpop.permute.xlu2 %992 }
 0x2d2   : > { %v873_v53 = vsel %vm871_vm3, %v868_v28, %v870_v27  ;;  %v1398_v28 = vld [vmem:[%s2080_s5 + $0x3] ss:$0 sm:$0xff] }
 0x2d3   : > { %v877_v31 = vadd.f32 %v873_v53, %v847_v30 }
 0x2d8   : > { %v896_v37 = vpop.permute.xlu1 %895 }
 0x2d9   : > { %v901_v0 = vsel %vm899_vm10, %v896_v37, %v898_v29  ;;  %v950_v33 = vpop.permute.xlu0 %949  ;;  %v1048_v48 = vpop.permute.xlu2 %1047 }
 0x2da   : > { %v905_v34 = vadd.f32 %v901_v0, %v877_v31 }
 0x2dc   : > { %v921_v36 = vadd.f32 %v1750_v59, %v905_v34 }
 0x2e0   : > { %v952_v38 = vpop.permute.xlu1 %951 }
 0x2e1   : > { %v956_v39 = vpop.permute.xlu0 %955  ;;  %v957_v7 = vsel %vm871_vm3, %v950_v33, %v952_v38  ;;  %v1054_v3 = vpop.permute.xlu2 %1053 }
 0x2e2   : > { %v961_v43 = vadd.f32 %v957_v7, %v920_v26  ;;  %v958_v51 = vsel %vm871_vm3, %v954_v9, %v956_v39  ;;  %v1394_v39 = vld [vmem:[%s2080_s5 + $0x5] ss:$0 sm:$0xff] }
 0x2e3   : > { %v962_v45 = vadd.f32 %v958_v51, %v921_v36  ;;  %v1404_v36 = vld [vmem:[%s2080_s5 + $0x4] ss:$0 sm:$0xff] }
 0x2e8   : > { %v991_v44 = vpop.permute.xlu1 %990 }
 0x2e9   : > { %v998_v14 = vsel %vm899_vm10, %v991_v44, %v993_v40  ;;  %v995_v42 = vpop.permute.xlu0 %994  ;;  %v1093_v47 = vpop.permute.xlu2 %1092  ;;  %v1402_v40 = vld [vmem:[%s2080_s5 + $0x6] ss:$0 sm:$0xff] }
 0x2ea   : > { %v1002_v49 = vadd.f32 %v998_v14, %v961_v43 }
 0x2ec   : > { %v1018_v50 = vadd.f32 %v1753_v10, %v1002_v49 }
 0x2f0   : > { %v997_v55 = vpop.permute.xlu1 %996 }
 0x2f1   : > { %v999_v59 = vsel %vm899_vm10, %v995_v42, %v997_v55  ;;  %v1050_v58 = vpop.permute.xlu0 %1049 }
 0x2f2   : > { %v1003_v56 = vadd.f32 %v999_v59, %v962_v45  ;;  %v1055_v61 = vsel %vm871_vm3, %v1048_v48, %v1050_v58  ;;  %v1397_v45 = vld [vmem:[%s2080_s5 + $0x8] ss:$0 sm:$0xff] }
 0x2f3   : > { %v1059_v62 = vadd.f32 %v1055_v61, %v1018_v50  ;;  %v1406_v50 = vld [vmem:[%s2080_s5 + $0x7] ss:$0 sm:$0xff] }
 0x2f4   : > { %v1019_v57 = vadd.f32 %v1756_v11, %v1003_v56 }
 0x2f8   : > { %v1052_v60 = vpop.permute.xlu1 %1051 }
 0x2f9   : > { %v1089_v54 = vpop.permute.xlu0 %1088  ;;  %v1056_v4 = vsel %vm871_vm3, %v1052_v60, %v1054_v3 }
 0x2fa   : > { %v1060_v5 = vadd.f32 %v1056_v4, %v1019_v57  ;;  %v1399_v4 = vld [vmem:[%s2080_s5 + $0xb] ss:$0 sm:$0xff] }
 0x300   : > { %v1091_v63 = vpop.permute.xlu1 %1090 }
 0x301   : > { %v1096_v2 = vsel %vm899_vm10, %v1089_v54, %v1091_v63  ;;  %v1095_v11 = vpop.permute.xlu0 %1094  ;;  %v1401_v54 = vld [vmem:[%s2080_s5 + $0x9] ss:$0 sm:$0xff] }
 0x302   : > { %v1848_v10 = vadd.f32 %v1096_v2, %v1059_v62  ;;  %v1097_v32 = vsel %vm899_vm10, %v1093_v47, %v1095_v11  ;;  %v1393_v11 = vld [vmem:[%s2080_s5 + $0xa] ss:$0 sm:$0xff] }
 0x303   : > { %v1864_v6 = vadd.f32 %v1097_v32, %v1060_v5 }
 0x304   : > { %1128 = vrot.lane.b32.xlu2 %v1848_v10, %s1456_s28  ;;  %1116 = vrot.lane.b32.xlu0 %v1848_v10, %s1455_s27  ;;  %v1190_v5 = vmul.f32 %v1406_v50, %v1848_v10 }
 0x305   : > { %1104 = vrot.lane.b32.xlu1 %v1848_v10, %s1454_s26  ;;  %v1191_v58 = vmul.f32 %v1406_v50, %v1864_v6 }
 0x30c   : > { %1164 = vrot.lane.b32.xlu2 %v1848_v10, %s1452_s24  ;;  %1152 = vrot.lane.b32.xlu0 %v1848_v10, %s1451_s23 }
 0x30d   : > { %1140 = vrot.lane.b32.xlu1 %v1848_v10, %s1457_s29 }
 0x314   : > { %1130 = vrot.lane.b32.xlu0 %v1864_v6, %s1456_s28  ;;  %1106 = vrot.lane.b32.xlu2 %v1864_v6, %s1454_s26 }
 0x315   : > { %1118 = vrot.lane.b32.xlu1 %v1864_v6, %s1455_s27 }
 0x31c   : > { %1166 = vrot.lane.b32.xlu0 %v1864_v6, %s1452_s24  ;;  %1142 = vrot.lane.b32.xlu2 %v1864_v6, %s1457_s29 }
 0x31d   : > { %1154 = vrot.lane.b32.xlu1 %v1864_v6, %s1451_s23 }
 0x324   : > { %1178 = vrot.lane.b32.xlu2 %v1864_v6, %s2088_s13  ;;  %690 = vrot.lane.b32.xlu0 %v1880_v8, %s1451_s23 }
 0x325   : > { %1176 = vrot.lane.b32.xlu1 %v1848_v10, %s2088_s13 }
 0x32c   : > { %704 = vrot.lane.b32.xlu0 %v1890_v12, %s1452_s24  ;;  %702 = vrot.lane.b32.xlu2 %v1880_v8, %s1452_s24 }
 0x32d   : > { %692 = vrot.lane.b32.xlu1 %v1890_v12, %s1451_s23 }
 0x334   : > { %732 = vrot.lane.b32.xlu0 %v1880_v8, %s1454_s26  ;;  %716 = vrot.lane.b32.xlu2 %v1890_v12, %s2088_s13 }
 0x335   : > { %714 = vrot.lane.b32.xlu1 %v1880_v8, %s2088_s13  ;;  %s2091_s13 = sshll.u32 %s2093_s10, 4 }
 0x336   : > { %s332_s22 = scalar_lea.vmem %s2084_s9, %s2091_s13 }
 0x33c   : > { %746 = vrot.lane.b32.xlu0 %v1890_v12, %s1455_s27  ;;  %744 = vrot.lane.b32.xlu2 %v1880_v8, %s1455_s27 }
 0x33d   : > { %734 = vrot.lane.b32.xlu1 %v1890_v12, %s1454_s26 }
 0x344   : > { %768 = vrot.lane.b32.xlu0 %v1880_v8, %s1457_s29  ;;  %758 = vrot.lane.b32.xlu2 %v1890_v12, %s1456_s28 }
 0x345   : > { %756 = vrot.lane.b32.xlu1 %v1880_v8, %s1456_s28 }
 0x34d   : > { %770 = vrot.lane.b32.xlu1 %v1890_v12, %s1457_s29 }
 0x35e   : > { %v1918_v13 = vpop.permute.xlu2 %1128 }
 0x35f   : > { %v1136_v31 = vmul.f32 %v1392_v25, %v1918_v13  ;;  %v1208_v10 = vmul.f32 %v1393_v11, %v1918_v13  ;;  %v1408_v13 = vld [vmem:[%s2082_s7] ss:$0 sm:$0xff] }
 0x366   : > { %v1920_v15 = vpop.permute.xlu2 %1164 }
 0x367   : > { %v1172_v57 = vmul.f32 %v1394_v39, %v1920_v15 }
 0x36e   : > { %v1107_v17 = vpop.permute.xlu2 %1106 }
 0x36f   : > { %v1113_v26 = vmul.f32 %v1396_v41, %v1107_v17  ;;  %v1197_v62 = vmul.f32 %v1397_v45, %v1107_v17 }
 0x376   : > { %v1117_v16 = vpop.permute.xlu0 %1116  ;;  %v1143_v23 = vpop.permute.xlu2 %1142 }
 0x377   : > { %v1105_v1 = vpop.permute.xlu1 %1104  ;;  %v1124_v21 = vmul.f32 %v1400_v35, %v1117_v16  ;;  %v1149_v33 = vmul.f32 %v1398_v28, %v1143_v23 }
 0x378   : > { %v1112_v20 = vmul.f32 %v1396_v41, %v1105_v1  ;;  %v1196_v46 = vmul.f32 %v1397_v45, %v1105_v1  ;;  %v1215_v41 = vmul.f32 %v1399_v4, %v1143_v23  ;;  %v1395_v1 = vld [vmem:[%s2080_s5 + $0xd] ss:$0 sm:$0xff] }
 0x37a   : > { %v1126_v29 = vadd.f32 %v1124_v21, %v1112_v20  ;;  %v1202_v20 = vmul.f32 %v1401_v54, %v1117_v16  ;;  %v1405_v21 = vld [vmem:[%s2080_s5 + $0xc] ss:$0 sm:$0xff]  ;;  %v1403_v16 = vld [vmem:[%s2080_s5 + $0xe] ss:$0 sm:$0xff] }
 0x37c   : > { %v1138_v34 = vadd.f32 %v1136_v31, %v1126_v29 }
 0x37e   : > { %v1922_v52 = vpop.permute.xlu0 %1152  ;;  %v1179_v14 = vpop.permute.xlu2 %1178 }
 0x37f   : > { %v1924_v18 = vpop.permute.xlu1 %1140  ;;  %v1160_v49 = vmul.f32 %v1404_v36, %v1922_v52  ;;  %v1185_v55 = vmul.f32 %v1402_v40, %v1179_v14 }
 0x380   : > { %v1148_v37 = vmul.f32 %v1398_v28, %v1924_v18 }
 0x382   : > { %v1150_v7 = vadd.f32 %v1148_v37, %v1138_v34  ;;  %v1220_v34 = vmul.f32 %v1405_v21, %v1922_v52 }
 0x384   : > { %v1162_v59 = vadd.f32 %v1160_v49, %v1150_v7 }
 0x386   : > { %v1131_v22 = vpop.permute.xlu0 %1130  ;;  %v1174_v2 = vadd.f32 %v1172_v57, %v1162_v59 }
 0x387   : > { %v1119_v24 = vpop.permute.xlu1 %1118  ;;  %v1137_v30 = vmul.f32 %v1392_v25, %v1131_v22  ;;  %v1209_v19 = vmul.f32 %v1393_v11, %v1131_v22 }
 0x388   : > { %v1125_v27 = vmul.f32 %v1400_v35, %v1119_v24  ;;  %v1203_v47 = vmul.f32 %v1401_v54, %v1119_v24 }
 0x38a   : > { %v1127_v53 = vadd.f32 %v1125_v27, %v1113_v26  ;;  %v1973_v27 = vpop.permute.xlu2 %702 }
 0x38c   : > { %v1139_v0 = vadd.f32 %v1137_v30, %v1127_v53  ;;  %v1214_v53 = vmul.f32 %v1399_v4, %v1924_v18 }
 0x38e   : > { %v1167_v9 = vpop.permute.xlu0 %1166  ;;  %v1151_v43 = vadd.f32 %v1149_v33, %v1139_v0  ;;  %v1410_v0 = vld [vmem:[%s2082_s7 + $0x1] ss:$0 sm:$0xff]  ;;  %v1233_v33 = vmul.f32 %v1403_v16, %v1179_v14 }
 0x38f   : > { %v1155_v38 = vpop.permute.xlu1 %1154  ;;  %v1173_v51 = vmul.f32 %v1394_v39, %v1167_v9  ;;  %v1227_v31 = vmul.f32 %v1395_v1, %v1167_v9  ;;  %v1226_v9 = vmul.f32 %v1395_v1, %v1920_v15 }
 0x390   : > { %v1161_v44 = vmul.f32 %v1404_v36, %v1155_v38  ;;  %v1221_v22 = vmul.f32 %v1405_v21, %v1155_v38  ;;  %v1407_v36 = vld [vmem:[%s2081_s6] ss:$0 sm:$0xff] }
 0x392   : > { %v1163_v42 = vadd.f32 %v1161_v44, %v1151_v43  ;;  %v710_v43 = vmul.f32 %v1410_v0, %v1973_v27  ;;  %v1412_v44 = vld [vmem:[%s2082_s7 + $0x2] ss:$0 sm:$0xff] }
 0x394   : > { %v1175_v56 = vadd.f32 %v1173_v51, %v1163_v42  ;;  %v2007_v51 = vpop.permute.xlu2 %716 }
 0x395   : > { %v723_v11 = vmul.f32 %v1412_v44, %v2007_v51 }
 0x396   : > { %v1187_v60 = vadd.f32 %v1185_v55, %v1175_v56  ;;  %v1958_v48 = vpop.permute.xlu0 %690  ;;  %v1414_v56 = vld [vmem:[%s2082_s7 + $0x3] ss:$0 sm:$0xff] }
 0x397   : > { %v1177_v61 = vpop.permute.xlu1 %1176  ;;  %v728_v54 = vmul.f32 %v1414_v56, %v1880_v8  ;;  %v729_v8 = vmul.f32 %v1414_v56, %v1890_v12  ;;  %v1409_v12 = vld [vmem:[%s2082_s7 + $0x8] ss:$0 sm:$0xff] }
 0x398   : > { %v1193_v63 = vadd.f32 %v1191_v58, %v1187_v60  ;;  %v1184_v3 = vmul.f32 %v1402_v40, %v1177_v61  ;;  %v698_v40 = vmul.f32 %v1408_v13, %v1958_v48  ;;  %v1232_v50 = vmul.f32 %v1403_v16, %v1177_v61 }
 0x39a   : > { %v1199_v32 = vadd.f32 %v1197_v62, %v1193_v63  ;;  %v1186_v6 = vadd.f32 %v1184_v3, %v1174_v2  ;;  %v712_v59 = vadd.f32 %v710_v43, %v698_v40  ;;  %v1415_v62 = vld [vmem:[%s2082_s7 + $0x4] ss:$0 sm:$0xff] }
 0x39c   : > { %v1205_v17 = vadd.f32 %v1203_v47, %v1199_v32  ;;  %v1192_v35 = vadd.f32 %v1190_v5, %v1186_v6  ;;  %v1416_v5 = vld [vmem:[%s2082_s7 + $0x5] ss:$0 sm:$0xff]  ;;  %v745_v6 = vpop.permute.xlu2 %744 }
 0x39e   : > { %v1211_v25 = vadd.f32 %v1209_v19, %v1205_v17  ;;  %v1198_v26 = vadd.f32 %v1196_v46, %v1192_v35  ;;  %v1975_v28 = vpop.permute.xlu0 %704 }
 0x39f   : > { %v1977_v24 = vpop.permute.xlu1 %692  ;;  %v711_v58 = vmul.f32 %v1410_v0, %v1975_v28 }
 0x3a0   : > { %v1217_v23 = vadd.f32 %v1215_v41, %v1211_v25  ;;  %v1204_v29 = vadd.f32 %v1202_v20, %v1198_v26  ;;  %v699_v57 = vmul.f32 %v1408_v13, %v1977_v24  ;;  %v752_v41 = vmul.f32 %v1416_v5, %v745_v6  ;;  %v1418_v20 = vld [vmem:[%s2082_s7 + $0x7] ss:$0 sm:$0xff]  ;;  %v1417_v26 = vld [vmem:[%s2082_s7 + $0x6] ss:$0 sm:$0xff] }
 0x3a2   : > { %v1223_v30 = vadd.f32 %v1221_v22, %v1217_v23  ;;  %v1210_v37 = vadd.f32 %v1208_v10, %v1204_v29  ;;  %v713_v3 = vadd.f32 %v711_v58, %v699_v57 }
 0x3a4   : > { %v1229_v38 = vadd.f32 %v1227_v31, %v1223_v30  ;;  %v1216_v18 = vadd.f32 %v1214_v53, %v1210_v37  ;;  %v725_v17 = vadd.f32 %v723_v11, %v713_v3  ;;  %v759_v37 = vpop.permute.xlu2 %758 }
 0x3a6   : > { %v1235_v39 = vadd.f32 %v1233_v33, %v1229_v38  ;;  %v1222_v7 = vadd.f32 %v1220_v34, %v1216_v18  ;;  %v733_v14 = vpop.permute.xlu0 %732  ;;  %v731_v16 = vadd.f32 %v729_v8, %v725_v17  ;;  %v782_v34 = vmul.f32 %v1409_v12, %v1958_v48 }
 0x3a7   : > { %v2003_v52 = vpop.permute.xlu1 %714  ;;  %v740_v32 = vmul.f32 %v1415_v62, %v733_v14  ;;  %v783_v48 = vmul.f32 %v1409_v12, %v1977_v24 }
 0x3a8   : > { %v2005_v49 = vadd.f32 %v1407_v36, %v1235_v39  ;;  %v1228_v42 = vadd.f32 %v1226_v9, %v1222_v7  ;;  %v722_v15 = vmul.f32 %v1412_v44, %v2003_v52  ;;  %v765_v9 = vmul.f32 %v1417_v26, %v759_v37 }
 0x3aa   : > { %v1353_v45 = vmul.f32 -1.442695, %v2005_v49  ;;  %v1234_v55 = vadd.f32 %v1232_v50, %v1228_v42  ;;  %v724_v61 = vadd.f32 %v722_v15, %v712_v59  ;;  %v1413_v50 = vld [vmem:[%s2082_s7 + $0xa] ss:$0 sm:$0xff] }
 0x3ac   : > { %1428 = vpow2.f32 %v1353_v45  ;;  %v2016_v60 = vadd.f32 %v1407_v36, %v1234_v55  ;;  %v730_v47 = vadd.f32 %v728_v54, %v724_v61  ;;  %v1411_v36 = vld [vmem:[%s2082_s7 + $0x9] ss:$0 sm:$0xff] }
 0x3ad   : > { %v788_v42 = vmul.f32 %v1411_v36, %v1973_v27  ;;  %v789_v3 = vmul.f32 %v1411_v36, %v1975_v28 }
 0x3ae   : > { %v1352_v63 = vmul.f32 -1.442695, %v2016_v60  ;;  %v747_v2 = vpop.permute.xlu0 %746  ;;  %v742_v35 = vadd.f32 %v740_v32, %v730_v47  ;;  %v1419_v32 = vld [vmem:[%s2083_s8] ss:$0 sm:$0xff] }
 0x3af   : > { %v735_v4 = vpop.permute.xlu1 %734  ;;  %v753_v31 = vmul.f32 %v1416_v5, %v747_v2 }
 0x3b0   : > { %1430 = vpow2.f32 %v1352_v63  ;;  %v741_v21 = vmul.f32 %v1415_v62, %v735_v4  ;;  %v754_v23 = vadd.f32 %v752_v41, %v742_v35  ;;  %v794_v63 = vmul.f32 %v1413_v50, %v2003_v52 }
 0x3b1   : > { %v795_v52 = vmul.f32 %v1413_v50, %v2007_v51 }
 0x3b2   : > { %v1429_v46 = vpop.eup %1428  ;;  %v743_v30 = vadd.f32 %v741_v21, %v731_v16 }
 0x3b3   : > { %v2027_v19 = vadd.f32 1.0, %v1429_v46 }
 0x3b4   : > { %v755_v18 = vadd.f32 %v753_v31, %v743_v30 }
 0x3b5   : > { %1432 = vrcp.f32 %v2027_v19  ;;  %v1276_v59 = vand.u32 2147483648, %v2027_v19  ;;  %vm1270_vm5 = vweird.f32 %v2027_v19  ;;  %v1274_v58 = vand.u32 2147483647, %v2027_v19 }
 0x3b6   : > { %v1431_v25 = vpop.eup %1430  ;;  %v769_v10 = vpop.permute.xlu0 %768  ;;  %v767_v15 = vadd.f32 %v765_v9, %v755_v18 }
 0x3b7   : > { %v1248_v1 = vadd.f32 1.0, %v1431_v25  ;;  %v757_v22 = vpop.permute.xlu1 %756  ;;  %v776_v53 = vmul.f32 %v1418_v20, %v769_v10  ;;  %v1277_v4 = vor.u32 1.1754944e-38, %v1276_v59  ;;  %vm1275_vm14 = vcmp.eq.f32.partialorder %v1274_v58, 8.507059e+37 }
 0x3b8   : > { %v764_v29 = vmul.f32 %v1417_v26, %v757_v22 }
 0x3b9   : > { %1434 = vrcp.f32 %v1248_v1  ;;  %v1261_v61 = vand.u32 2147483648, %v1248_v1  ;;  %v1259_v24 = vand.u32 2147483647, %v1248_v1  ;;  %vm1255_vm13 = vweird.f32 %v1248_v1 }
 0x3ba   : > { %v766_v13 = vadd.f32 %v764_v29, %v754_v23 }
 0x3bb   : > { %v1433_v0 = vpop.eup %1432  ;;  %v1262_v6 = vor.u32 1.1754944e-38, %v1261_v61  ;;  %vm1260_vm0 = vcmp.eq.f32.partialorder %v1259_v24, 8.507059e+37 }
 0x3bc   : > { %v1266_v33 = vmul.f32 %v1433_v0, %v2027_v19  ;;  %v778_v38 = vadd.f32 %v776_v53, %v766_v13  ;;  %vm1271_vm4 = vweird.f32 %v1433_v0 }
 0x3bd   : > { %vm2053_vm11 = vmor %vm1270_vm5, %vm1271_vm4 }
 0x3be   : > { %v1267_v39 = vsub.f32 1.0, %v1266_v33  ;;  %v784_v7 = vadd.f32 %v782_v34, %v778_v38 }
 0x3bf   : > { %v1435_v40 = vpop.eup %1434  ;;  %v771_v43 = vpop.permute.xlu1 %770 }
 0x3c0   : > { %v1268_v44 = vmul.f32 %v1433_v0, %v1267_v39  ;;  %v1251_v14 = vmul.f32 %v1435_v40, %v1248_v1  ;;  %v777_v45 = vmul.f32 %v1418_v20, %v771_v43  ;;  %v790_v57 = vadd.f32 %v788_v42, %v784_v7 }
 0x3c1   : > { %vm1256_vm12 = vweird.f32 %v1435_v40 }
 0x3c2   : > { %v1269_v55 = vadd.f32 %v1433_v0, %v1268_v44  ;;  %v1252_v56 = vsub.f32 1.0, %v1251_v14  ;;  %v779_v27 = vadd.f32 %v777_v45, %v767_v15  ;;  %v796_v5 = vadd.f32 %v794_v63, %v790_v57  ;;  %vm1257_vm15 = vmor %vm1255_vm13, %vm1256_vm12 }
 0x3c4   : > { %v1253_v54 = vmul.f32 %v1435_v40, %v1252_v56  ;;  %v1273_v2 = vsel %vm2053_vm11, %v1433_v0, %v1269_v55  ;;  %v785_v11 = vadd.f32 %v783_v48, %v779_v27  ;;  %v802_v41 = vadd.f32 %v1419_v32, %v796_v5 }
 0x3c5   : > { %v1278_v19 = vsel %vm1275_vm14, %v1277_v4, %v1273_v2 }
 0x3c6   : > { %v1254_v47 = vadd.f32 %v1435_v40, %v1253_v54  ;;  %v791_v46 = vadd.f32 %v789_v3, %v785_v11  ;;  %v1281_v20 = vmul.f32 %v1278_v19, %v2005_v49 }
 0x3c8   : > { %v1258_v17 = vsel %vm1257_vm15, %v1435_v40, %v1254_v47  ;;  %v797_v8 = vadd.f32 %v795_v52, %v791_v46 }
 0x3c9   : > { %v1263_v28 = vsel %vm1260_vm0, %v1262_v6, %v1258_v17 }
 0x3ca   : > { %v1280_v35 = vmul.f32 %v1263_v28, %v2016_v60  ;;  %v803_v21 = vadd.f32 %v1419_v32, %v797_v8 }
 0x3cc   : > { %v1282_v25 = vadd.f32 %v1280_v35, %v802_v41  ;;  %v1283_v26 = vadd.f32 %v1281_v20, %v803_v21 }
 0x3ce   : > { %1284 = vst [vmem:[%s332_s22] sm:$0xff] %v1282_v25 }
 0x3cf   : > { %1285 = vst [vmem:[%s332_s22 + $0x8] sm:$0xff] %v1283_v26 }
 0x3d0 PF: > { %s19_s30 = sadd.s32 1, %s1444_s30  }
 0x3d1   : > { %p16_p4 = scmp.ge.s32.totalorder %s19_s30, 4  }
 0x3d3   :  { %18 = sbr.rel (!%p16_p4) target bundleno = 1 (0x1), region = 86 }

</bundles_post_ra>
